<compile_context>
chip_gen: v6e
topology: v6e:2x2x1
jax: 0.10.0
libtpu: 0.0.40
codegen_flags: <defaults>
</compile_context>

<pallas_src>
import math
import jax
import jax.numpy as jnp
from jax import lax
from jax.experimental import pallas as pl
from jax.experimental.pallas import tpu as pltpu

# ----------------------------- model config (small, synthetic) ------------------------
VOCAB = 100
HIDDEN = 32
N_HEADS = 2
HEAD_DIM = HIDDEN // N_HEADS
FFN = 64
N_LAYERS = 2
MAX_SEQ = 8
N_CLASSES = 3
LN_EPS = 1e-12
LANE = 128            # lane-dense width for kernel outputs and QKV column tiles

_RESIDENT = pl.BlockSpec(memory_space=pltpu.MemorySpace.VMEM)   # whole array, stays in VMEM


# ----------------------------- in-kernel helpers (pure functions on values) -----------
def _layer_norm(x, gamma, beta):
    """LayerNorm over the hidden axis (f32 statistics)."""
    mean = jnp.mean(x, axis=-1, keepdims=True)
    xc = x - mean
    var = jnp.mean(xc * xc, axis=-1, keepdims=True)
    return xc * lax.rsqrt(var + LN_EPS) * gamma + beta


def _gelu(x):
    c = 0.7978845608028654  # sqrt(2/pi); tanh-approx GELU (f32)
    return 0.5 * x * (1.0 + jnp.tanh(c * (x + 0.044715 * x * x * x)))


def _bf16(x):
    return x.astype(jnp.bfloat16)


# ----------------------------- fused encoder + pooler + head kernel -------------------
def _encoder_kernel(x_ref, mask_ref,
                    eg_ref, eb_ref,
                    wqkv_ref, bqkv_ref, wo_ref, bo_ref,
                    l1g_ref, l1b_ref,
                    w1_ref, b1_ref, w2_ref, b2_ref,
                    l2g_ref, l2b_ref,
                    pw_ref, pb_ref, ow_ref, ob_ref,
                    pooled_ref, logits_ref):
    """One grid step = one batch sample (S, H). Weights are resident, whole-array refs."""
    H, nH, Dh = HIDDEN, N_HEADS, HEAD_DIM
    scale = 1.0 / math.sqrt(Dh)

    mask = mask_ref[0]                                            # (S, S) additive, f32

    # Embedding LayerNorm (no residual, no zero tensor).
    x2 = _layer_norm(x_ref[0], eg_ref[...], eb_ref[...])          # (S, H) f32

    # Static unroll over the (2) layers; for 12+ layers use a layer grid axis instead.
    for l in range(N_LAYERS):
        wqkv = wqkv_ref[l]                                        # (H, 3*LANE) bf16, Q|K|V tiles
        bqkv = bqkv_ref[l]                                        # (1, 3*LANE) f32
        wo = wo_ref[l]                                            # (H, H)  bf16
        bo = bo_ref[l]                                            # (1, H)  f32
        w1 = w1_ref[l]; b1 = b1_ref[l]                            # (H, FFN) bf16 / (1, FFN)
        w2 = w2_ref[l]; b2 = b2_ref[l]                            # (FFN, H) bf16 / (1, H)

        # ---- fused QKV projection: one MXU pass; Q/K/V in separate 128-lane tiles ----
        qkv = jnp.dot(_bf16(x2), wqkv, preferred_element_type=jnp.float32) + bqkv
        q = qkv[:, 0 * LANE:0 * LANE + H]                         # lane-tile-aligned slices
        k = qkv[:, 1 * LANE:1 * LANE + H]
        v = qkv[:, 2 * LANE:2 * LANE + H]

        # ---- multi-head attention: per-head scores/softmax/ctx, heads concatenated,
        #      ONE attention-output projection per sample per layer (no scratch, no k.T)
        ctx_heads = []
        for h in range(nH):
            c0 = h * Dh
            qh = _bf16(q[:, c0:c0 + Dh])                          # (S, Dh)
            kh = _bf16(k[:, c0:c0 + Dh])
            vh = _bf16(v[:, c0:c0 + Dh])
            # contract last dims of q and k directly (no materialized transpose)
            s = lax.dot_general(qh, kh, (((1,), (1,)), ((), ())),
                                preferred_element_type=jnp.float32)
            s = s * scale + mask                                  # (S, S)
            s_max = jnp.max(s, axis=-1, keepdims=True)
            p = jnp.exp(s - s_max)
            p = p * pl.reciprocal(jnp.sum(p, axis=-1, keepdims=True), approx=True)
            ctx_heads.append(jnp.dot(_bf16(p), vh,
                                     preferred_element_type=jnp.float32))  # (S, Dh)
        ctx = jnp.concatenate(ctx_heads, axis=-1)                 # (S, H)
        attn_out = jnp.dot(_bf16(ctx), wo, preferred_element_type=jnp.float32) + bo
        x2 = _layer_norm(x2 + attn_out, l1g_ref[l], l1b_ref[l])

        # ---- feed-forward ----
        h1 = _gelu(jnp.dot(_bf16(x2), w1, preferred_element_type=jnp.float32) + b1)
        ff = jnp.dot(_bf16(h1), w2, preferred_element_type=jnp.float32) + b2
        x2 = _layer_norm(x2 + ff, l2g_ref[l], l2b_ref[l])

    # ---- BERT pooler + classifier head (f32 matmuls to match nn.Linear numerics).
    # At S=8 the per-sample block is exactly one 8-sublane tile, so this is already the
    # minimal MXU granularity for the CLS row; the wrapper selects row 0.
    # nn.Dropout(p=0.4) is identity at inference, so the head consumes pooled directly.
    pooled_all = jnp.tanh(jnp.dot(x2, pw_ref[...],
                                  preferred_element_type=jnp.float32) + pb_ref[...])
    pooled_ref[0] = pooled_all                                    # (S, 128) f32, lane-dense
    logits_ref[0] = jnp.dot(pooled_all, ow_ref[...],
                            preferred_element_type=jnp.float32) + ob_ref[...]


def _fused_forward(x_emb, addmask, p):
    B, S, H = x_emb.shape
    blk_x = pl.BlockSpec((1, S, H), lambda b: (b, 0, 0))
    blk_m = pl.BlockSpec((1, S, S), lambda b: (b, 0, 0))
    blk_o = pl.BlockSpec((1, S, LANE), lambda b: (b, 0, 0))
    return pl.pallas_call(
        _encoder_kernel,
        grid=(B,),
        out_shape=(jax.ShapeDtypeStruct((B, S, LANE), jnp.float32),
                   jax.ShapeDtypeStruct((B, S, LANE), jnp.float32)),
        in_specs=[blk_x, blk_m] + [_RESIDENT] * 18,
        out_specs=(blk_o, blk_o),
        compiler_params=pltpu.CompilerParams(
            dimension_semantics=("parallel",)),   # batch across TCs on v7x megacore
    )(x_emb, addmask,
      p["emb_ln_g"], p["emb_ln_b"],
      p["wqkv"], p["bqkv"], p["wo"], p["bo"],
      p["ln1_g"], p["ln1_b"],
      p["w1"], p["b1"], p["w2"], p["b2"],
      p["ln2_g"], p["ln2_b"],
      p["pool_w"], p["pool_b"], p["out_w"], p["out_b"])


# ----------------------------- parameter construction ---------------------------------
def init_params(key):
    def nrm(k, shape, std=0.02):
        return (std * jax.random.normal(k, shape)).astype(jnp.float32)

    keys = iter(jax.random.split(key, 64))
    H, F, L = HIDDEN, FFN, N_LAYERS

    wq = jnp.stack([nrm(next(keys), (H, H)) for _ in range(L)])
    wk = jnp.stack([nrm(next(keys), (H, H)) for _ in range(L)])
    wv = jnp.stack([nrm(next(keys), (H, H)) for _ in range(L)])
    # fused QKV weight, padded so Q/K/V each occupy their own 128-lane tile
    wqkv = jnp.zeros((L, H, 3 * LANE), jnp.float32)
    wqkv = wqkv.at[:, :, 0:H].set(wq)
    wqkv = wqkv.at[:, :, LANE:LANE + H].set(wk)
    wqkv = wqkv.at[:, :, 2 * LANE:2 * LANE + H].set(wv)

    wo = jnp.stack([nrm(next(keys), (H, H)) for _ in range(L)])
    w1 = jnp.stack([nrm(next(keys), (H, F)) for _ in range(L)])
    w2 = jnp.stack([nrm(next(keys), (F, H)) for _ in range(L)])

    pool_w = nrm(next(keys), (H, H))
    out_w = nrm(next(keys), (H, N_CLASSES))
    # lane-dense padding of pooler / classifier weights to 128 output lanes (zeros elsewhere)
    pool_w_pad = jnp.zeros((H, LANE), jnp.float32).at[:, :H].set(pool_w)
    out_w_pad = jnp.zeros((LANE, LANE), jnp.float32).at[:H, :N_CLASSES].set(out_w)

    return {
        # embeddings (gathered in JAX glue)
        "word_emb": nrm(next(keys), (VOCAB, H)),
        "pos_emb": nrm(next(keys), (MAX_SEQ, H)),
        "type_emb": nrm(next(keys), (2, H)),
        "emb_ln_g": jnp.ones((1, H), jnp.float32),
        "emb_ln_b": jnp.zeros((1, H), jnp.float32),
        # stacked per-layer weights; MXU operands in bf16, biases / LN params in f32
        "wqkv": wqkv.astype(jnp.bfloat16),
        "bqkv": jnp.zeros((L, 1, 3 * LANE), jnp.float32),
        "wo": wo.astype(jnp.bfloat16),
        "bo": jnp.zeros((L, 1, H), jnp.float32),
        "ln1_g": jnp.ones((L, 1, H), jnp.float32),
        "ln1_b": jnp.zeros((L, 1, H), jnp.float32),
        "w1": w1.astype(jnp.bfloat16),
        "b1": jnp.zeros((L, 1, F), jnp.float32),
        "w2": w2.astype(jnp.bfloat16),
        "b2": jnp.zeros((L, 1, H), jnp.float32),
        "ln2_g": jnp.ones((L, 1, H), jnp.float32),
        "ln2_b": jnp.zeros((L, 1, H), jnp.float32),
        # pooler + classifier head (lane-padded, kept in f32 to match nn.Linear)
        "pool_w": pool_w_pad,
        "pool_b": jnp.zeros((1, LANE), jnp.float32),
        "out_w": out_w_pad,
        "out_b": jnp.zeros((1, LANE), jnp.float32),
    }


# ----------------------------- forward pass -------------------------------------------
def span_classifier_forward(params, input_ids, attention_mask):
    """Returns (pooled_output, logits) — matching the PyTorch module's forward."""
    B, S = input_ids.shape

    # Embedding lookup (JAX glue).
    emb = (params["word_emb"][input_ids]
           + params["pos_emb"][None, :S, :]
           + params["type_emb"][0][None, None, :]).astype(jnp.float32)   # (B, S, H)

    # Additive attention mask, broadcast ONCE to (B, S, S): 0 attended, -1e9 padded.
    addmask = jnp.broadcast_to(
        ((1.0 - attention_mask.astype(jnp.float32)) * -1e9)[:, None, :], (B, S, S))

    pooled_all, logits_all = _fused_forward(emb, addmask, params)

    # Select CLS rows / valid class columns from the lane-dense kernel outputs.
    pooled = pooled_all[:, 0, :HIDDEN]
    logits = logits_all[:, 0, :N_CLASSES]
    return pooled, logits


# ----------------------------- main ----------------------------------------------------
if __name__ == "__main__":
    key = jax.random.PRNGKey(0)
    k_param, k_ids = jax.random.split(key)

    params = init_params(k_param)

    B, S = 2, MAX_SEQ
    input_ids = jax.random.randint(k_ids, (B, S), 0, VOCAB, dtype=jnp.int32)
    attention_mask = jnp.ones((B, S), dtype=jnp.int32)
    attention_mask = attention_mask.at[1, -2:].set(0)   # pad last two tokens of sample 1

    pooled, logits = jax.jit(span_classifier_forward)(params, input_ids, attention_mask)
    jax.block_until_ready((pooled, logits))

    assert pooled.shape == (B, HIDDEN) and logits.shape == (B, N_CLASSES)
    assert bool(jnp.all(jnp.isfinite(pooled))) and bool(jnp.all(jnp.isfinite(logits)))
    print("KERNEL_OK")
</pallas_src>

<mosaic_0001>
module attributes {stable_mosaic.version = 11 : i64} {
  func.func @_encoder_kernel(%arg0: i32, %arg1: memref<1x8x32xf32, #tpu.memory_space<vmem>>, %arg2: memref<1x8x8xf32, #tpu.memory_space<vmem>>, %arg3: memref<1x32xf32, #tpu.memory_space<vmem>>, %arg4: memref<1x32xf32, #tpu.memory_space<vmem>>, %arg5: memref<2x32x384xbf16, #tpu.memory_space<vmem>>, %arg6: memref<2x1x384xf32, #tpu.memory_space<vmem>>, %arg7: memref<2x32x32xbf16, #tpu.memory_space<vmem>>, %arg8: memref<2x1x32xf32, #tpu.memory_space<vmem>>, %arg9: memref<2x1x32xf32, #tpu.memory_space<vmem>>, %arg10: memref<2x1x32xf32, #tpu.memory_space<vmem>>, %arg11: memref<2x32x64xbf16, #tpu.memory_space<vmem>>, %arg12: memref<2x1x64xf32, #tpu.memory_space<vmem>>, %arg13: memref<2x64x32xbf16, #tpu.memory_space<vmem>>, %arg14: memref<2x1x32xf32, #tpu.memory_space<vmem>>, %arg15: memref<2x1x32xf32, #tpu.memory_space<vmem>>, %arg16: memref<2x1x32xf32, #tpu.memory_space<vmem>>, %arg17: memref<32x128xf32, #tpu.memory_space<vmem>>, %arg18: memref<1x128xf32, #tpu.memory_space<vmem>>, %arg19: memref<128x128xf32, #tpu.memory_space<vmem>>, %arg20: memref<1x128xf32, #tpu.memory_space<vmem>>, %arg21: memref<1x8x128xf32, #tpu.memory_space<vmem>>, %arg22: memref<1x8x128xf32, #tpu.memory_space<vmem>>) attributes {dimension_semantics = [#tpu.dimension_semantics<parallel>], iteration_bounds = array<i64: 2>, scalar_prefetch = 0 : i64, scratch_operands = 0 : i64, tpu.core_type = #tpu.core_type<tc>, window_params = [{transform_indices = @transform_0, window_bounds = array<i64: 1, 8, 32>}, {transform_indices = @transform_1, window_bounds = array<i64: 1, 8, 8>}, {pipeline_mode = #tpu.pipeline_mode<synchronous>, transform_indices = @transform_2, window_bounds = array<i64: 1, 32>}, {pipeline_mode = #tpu.pipeline_mode<synchronous>, transform_indices = @transform_3, window_bounds = array<i64: 1, 32>}, {pipeline_mode = #tpu.pipeline_mode<synchronous>, transform_indices = @transform_4, window_bounds = array<i64: 2, 32, 384>}, {pipeline_mode = #tpu.pipeline_mode<synchronous>, transform_indices = @transform_5, window_bounds = array<i64: 2, 1, 384>}, {pipeline_mode = #tpu.pipeline_mode<synchronous>, transform_indices = @transform_6, window_bounds = array<i64: 2, 32, 32>}, {pipeline_mode = #tpu.pipeline_mode<synchronous>, transform_indices = @transform_7, window_bounds = array<i64: 2, 1, 32>}, {pipeline_mode = #tpu.pipeline_mode<synchronous>, transform_indices = @transform_8, window_bounds = array<i64: 2, 1, 32>}, {pipeline_mode = #tpu.pipeline_mode<synchronous>, transform_indices = @transform_9, window_bounds = array<i64: 2, 1, 32>}, {pipeline_mode = #tpu.pipeline_mode<synchronous>, transform_indices = @transform_10, window_bounds = array<i64: 2, 32, 64>}, {pipeline_mode = #tpu.pipeline_mode<synchronous>, transform_indices = @transform_11, window_bounds = array<i64: 2, 1, 64>}, {pipeline_mode = #tpu.pipeline_mode<synchronous>, transform_indices = @transform_12, window_bounds = array<i64: 2, 64, 32>}, {pipeline_mode = #tpu.pipeline_mode<synchronous>, transform_indices = @transform_13, window_bounds = array<i64: 2, 1, 32>}, {pipeline_mode = #tpu.pipeline_mode<synchronous>, transform_indices = @transform_14, window_bounds = array<i64: 2, 1, 32>}, {pipeline_mode = #tpu.pipeline_mode<synchronous>, transform_indices = @transform_15, window_bounds = array<i64: 2, 1, 32>}, {pipeline_mode = #tpu.pipeline_mode<synchronous>, transform_indices = @transform_16, window_bounds = array<i64: 32, 128>}, {pipeline_mode = #tpu.pipeline_mode<synchronous>, transform_indices = @transform_17, window_bounds = array<i64: 1, 128>}, {pipeline_mode = #tpu.pipeline_mode<synchronous>, transform_indices = @transform_18, window_bounds = array<i64: 128, 128>}, {pipeline_mode = #tpu.pipeline_mode<synchronous>, transform_indices = @transform_19, window_bounds = array<i64: 1, 128>}, {transform_indices = @transform_20, window_bounds = array<i64: 1, 8, 128>}, {transform_indices = @transform_21, window_bounds = array<i64: 1, 8, 128>}]} {
    %c0 = arith.constant 0 : index
    %c0_0 = arith.constant 0 : index
    %c0_1 = arith.constant 0 : index
    %0 = vector.load %arg2[%c0, %c0_0, %c0_1] : memref<1x8x8xf32, #tpu.memory_space<vmem>>, vector<1x8x8xf32>
    %1 = vector.shape_cast %0 : vector<1x8x8xf32> to vector<8x8xf32>
    %c0_2 = arith.constant 0 : index
    %c0_3 = arith.constant 0 : index
    %c0_4 = arith.constant 0 : index
    %2 = vector.load %arg1[%c0_2, %c0_3, %c0_4] : memref<1x8x32xf32, #tpu.memory_space<vmem>>, vector<1x8x32xf32>
    %3 = vector.shape_cast %2 : vector<1x8x32xf32> to vector<8x32xf32>
    %c0_5 = arith.constant 0 : index
    %c0_6 = arith.constant 0 : index
    %4 = vector.load %arg3[%c0_5, %c0_6] : memref<1x32xf32, #tpu.memory_space<vmem>>, vector<1x32xf32>
    %c0_7 = arith.constant 0 : index
    %c0_8 = arith.constant 0 : index
    %5 = vector.load %arg4[%c0_7, %c0_8] : memref<1x32xf32, #tpu.memory_space<vmem>>, vector<1x32xf32>
    %cst = arith.constant dense<0.000000e+00> : vector<8xf32>
    %6 = vector.multi_reduction <add>, %3, %cst [1] : vector<8x32xf32> to vector<8xf32>
    %7 = vector.shape_cast %6 : vector<8xf32> to vector<8x1xf32>
    %cst_9 = arith.constant 3.200000e+01 : f32
    %8 = vector.broadcast %cst_9 : f32 to vector<8x1xf32>
    %9 = arith.divf %7, %8 : vector<8x1xf32>
    %10 = vector.broadcast %9 : vector<8x1xf32> to vector<8x32xf32>
    %11 = arith.subf %3, %10 : vector<8x32xf32>
    %12 = arith.mulf %11, %11 : vector<8x32xf32>
    %cst_10 = arith.constant dense<0.000000e+00> : vector<8xf32>
    %13 = vector.multi_reduction <add>, %12, %cst_10 [1] : vector<8x32xf32> to vector<8xf32>
    %14 = vector.shape_cast %13 : vector<8xf32> to vector<8x1xf32>
    %cst_11 = arith.constant 3.200000e+01 : f32
    %15 = vector.broadcast %cst_11 : f32 to vector<8x1xf32>
    %16 = arith.divf %14, %15 : vector<8x1xf32>
    %cst_12 = arith.constant 9.99999996E-13 : f32
    %17 = vector.broadcast %cst_12 : f32 to vector<8x1xf32>
    %18 = arith.addf %16, %17 : vector<8x1xf32>
    %19 = math.rsqrt %18 : vector<8x1xf32>
    %20 = vector.broadcast %19 : vector<8x1xf32> to vector<8x32xf32>
    %21 = arith.mulf %11, %20 : vector<8x32xf32>
    %22 = vector.broadcast %4 : vector<1x32xf32> to vector<8x32xf32>
    %23 = arith.mulf %21, %22 : vector<8x32xf32>
    %24 = vector.broadcast %5 : vector<1x32xf32> to vector<8x32xf32>
    %25 = arith.addf %23, %24 : vector<8x32xf32>
    %c0_13 = arith.constant 0 : index
    %c0_14 = arith.constant 0 : index
    %c0_15 = arith.constant 0 : index
    %26 = vector.load %arg5[%c0_13, %c0_14, %c0_15] : memref<2x32x384xbf16, #tpu.memory_space<vmem>>, vector<1x32x384xbf16>
    %27 = vector.shape_cast %26 : vector<1x32x384xbf16> to vector<32x384xbf16>
    %c0_16 = arith.constant 0 : index
    %c0_17 = arith.constant 0 : index
    %c0_18 = arith.constant 0 : index
    %28 = vector.load %arg6[%c0_16, %c0_17, %c0_18] : memref<2x1x384xf32, #tpu.memory_space<vmem>>, vector<1x1x384xf32>
    %29 = vector.shape_cast %28 : vector<1x1x384xf32> to vector<1x384xf32>
    %c0_19 = arith.constant 0 : index
    %c0_20 = arith.constant 0 : index
    %c0_21 = arith.constant 0 : index
    %30 = vector.load %arg7[%c0_19, %c0_20, %c0_21] : memref<2x32x32xbf16, #tpu.memory_space<vmem>>, vector<1x32x32xbf16>
    %31 = vector.shape_cast %30 : vector<1x32x32xbf16> to vector<32x32xbf16>
    %c0_22 = arith.constant 0 : index
    %c0_23 = arith.constant 0 : index
    %c0_24 = arith.constant 0 : index
    %32 = vector.load %arg8[%c0_22, %c0_23, %c0_24] : memref<2x1x32xf32, #tpu.memory_space<vmem>>, vector<1x1x32xf32>
    %33 = vector.shape_cast %32 : vector<1x1x32xf32> to vector<1x32xf32>
    %c0_25 = arith.constant 0 : index
    %c0_26 = arith.constant 0 : index
    %c0_27 = arith.constant 0 : index
    %34 = vector.load %arg11[%c0_25, %c0_26, %c0_27] : memref<2x32x64xbf16, #tpu.memory_space<vmem>>, vector<1x32x64xbf16>
    %35 = vector.shape_cast %34 : vector<1x32x64xbf16> to vector<32x64xbf16>
    %c0_28 = arith.constant 0 : index
    %c0_29 = arith.constant 0 : index
    %c0_30 = arith.constant 0 : index
    %36 = vector.load %arg12[%c0_28, %c0_29, %c0_30] : memref<2x1x64xf32, #tpu.memory_space<vmem>>, vector<1x1x64xf32>
    %37 = vector.shape_cast %36 : vector<1x1x64xf32> to vector<1x64xf32>
    %c0_31 = arith.constant 0 : index
    %c0_32 = arith.constant 0 : index
    %c0_33 = arith.constant 0 : index
    %38 = vector.load %arg13[%c0_31, %c0_32, %c0_33] : memref<2x64x32xbf16, #tpu.memory_space<vmem>>, vector<1x64x32xbf16>
    %39 = vector.shape_cast %38 : vector<1x64x32xbf16> to vector<64x32xbf16>
    %c0_34 = arith.constant 0 : index
    %c0_35 = arith.constant 0 : index
    %c0_36 = arith.constant 0 : index
    %40 = vector.load %arg14[%c0_34, %c0_35, %c0_36] : memref<2x1x32xf32, #tpu.memory_space<vmem>>, vector<1x1x32xf32>
    %41 = vector.shape_cast %40 : vector<1x1x32xf32> to vector<1x32xf32>
    %42 = arith.truncf %25 : vector<8x32xf32> to vector<8x32xbf16>
    %cst_37 = arith.constant dense<0.000000e+00> : vector<8x384xf32>
    %43 = tpu.matmul %42, %27, %cst_37 {dimension_numbers = #tpu.dot_dimension_numbers<[1], [0], [0], [1], [0, 0, 1, 1], [], []>} : vector<8x32xbf16>, vector<32x384xbf16>, vector<8x384xf32> -> vector<8x384xf32>
    %44 = vector.broadcast %29 : vector<1x384xf32> to vector<8x384xf32>
    %45 = arith.addf %43, %44 : vector<8x384xf32>
    %46 = vector.extract_strided_slice %45 {offsets = [0, 0], sizes = [8, 32], strides = [1, 1]} : vector<8x384xf32> to vector<8x32xf32>
    %47 = vector.extract_strided_slice %45 {offsets = [0, 128], sizes = [8, 32], strides = [1, 1]} : vector<8x384xf32> to vector<8x32xf32>
    %48 = vector.extract_strided_slice %45 {offsets = [0, 256], sizes = [8, 32], strides = [1, 1]} : vector<8x384xf32> to vector<8x32xf32>
    %49 = vector.extract_strided_slice %46 {offsets = [0, 0], sizes = [8, 16], strides = [1, 1]} : vector<8x32xf32> to vector<8x16xf32>
    %50 = arith.truncf %49 : vector<8x16xf32> to vector<8x16xbf16>
    %51 = vector.extract_strided_slice %47 {offsets = [0, 0], sizes = [8, 16], strides = [1, 1]} : vector<8x32xf32> to vector<8x16xf32>
    %52 = arith.truncf %51 : vector<8x16xf32> to vector<8x16xbf16>
    %53 = vector.extract_strided_slice %48 {offsets = [0, 0], sizes = [8, 16], strides = [1, 1]} : vector<8x32xf32> to vector<8x16xf32>
    %54 = arith.truncf %53 : vector<8x16xf32> to vector<8x16xbf16>
    %cst_38 = arith.constant dense<0.000000e+00> : vector<8x8xf32>
    %55 = tpu.matmul %50, %52, %cst_38 {dimension_numbers = #tpu.dot_dimension_numbers<[1], [1], [0], [0], [0, 0, 1, 0], [], []>} : vector<8x16xbf16>, vector<8x16xbf16>, vector<8x8xf32> -> vector<8x8xf32>
    %cst_39 = arith.constant 2.500000e-01 : f32
    %56 = vector.broadcast %cst_39 : f32 to vector<8x8xf32>
    %57 = arith.mulf %55, %56 : vector<8x8xf32>
    %58 = arith.addf %57, %1 : vector<8x8xf32>
    %cst_40 = arith.constant dense<0xFF800000> : vector<8xf32>
    %59 = vector.multi_reduction <maximumf>, %58, %cst_40 [1] : vector<8x8xf32> to vector<8xf32>
    %60 = vector.shape_cast %59 : vector<8xf32> to vector<8x1xf32>
    %61 = vector.broadcast %60 : vector<8x1xf32> to vector<8x8xf32>
    %62 = arith.subf %58, %61 : vector<8x8xf32>
    %63 = math.exp %62 : vector<8x8xf32>
    %cst_41 = arith.constant dense<0.000000e+00> : vector<8xf32>
    %64 = vector.multi_reduction <add>, %63, %cst_41 [1] : vector<8x8xf32> to vector<8xf32>
    %65 = vector.shape_cast %64 : vector<8xf32> to vector<8x1xf32>
    %66 = tpu.reciprocal %65 {approx = true} : vector<8x1xf32> -> vector<8x1xf32>
    %67 = vector.broadcast %66 : vector<8x1xf32> to vector<8x8xf32>
    %68 = arith.mulf %63, %67 : vector<8x8xf32>
    %69 = arith.truncf %68 : vector<8x8xf32> to vector<8x8xbf16>
    %cst_42 = arith.constant dense<0.000000e+00> : vector<8x16xf32>
    %70 = tpu.matmul %69, %54, %cst_42 {dimension_numbers = #tpu.dot_dimension_numbers<[1], [0], [0], [1], [0, 0, 1, 1], [], []>} : vector<8x8xbf16>, vector<8x16xbf16>, vector<8x16xf32> -> vector<8x16xf32>
    %71 = vector.extract_strided_slice %46 {offsets = [0, 16], sizes = [8, 16], strides = [1, 1]} : vector<8x32xf32> to vector<8x16xf32>
    %72 = arith.truncf %71 : vector<8x16xf32> to vector<8x16xbf16>
    %73 = vector.extract_strided_slice %47 {offsets = [0, 16], sizes = [8, 16], strides = [1, 1]} : vector<8x32xf32> to vector<8x16xf32>
    %74 = arith.truncf %73 : vector<8x16xf32> to vector<8x16xbf16>
    %75 = vector.extract_strided_slice %48 {offsets = [0, 16], sizes = [8, 16], strides = [1, 1]} : vector<8x32xf32> to vector<8x16xf32>
    %76 = arith.truncf %75 : vector<8x16xf32> to vector<8x16xbf16>
    %cst_43 = arith.constant dense<0.000000e+00> : vector<8x8xf32>
    %77 = tpu.matmul %72, %74, %cst_43 {dimension_numbers = #tpu.dot_dimension_numbers<[1], [1], [0], [0], [0, 0, 1, 0], [], []>} : vector<8x16xbf16>, vector<8x16xbf16>, vector<8x8xf32> -> vector<8x8xf32>
    %cst_44 = arith.constant 2.500000e-01 : f32
    %78 = vector.broadcast %cst_44 : f32 to vector<8x8xf32>
    %79 = arith.mulf %77, %78 : vector<8x8xf32>
    %80 = arith.addf %79, %1 : vector<8x8xf32>
    %cst_45 = arith.constant dense<0xFF800000> : vector<8xf32>
    %81 = vector.multi_reduction <maximumf>, %80, %cst_45 [1] : vector<8x8xf32> to vector<8xf32>
    %82 = vector.shape_cast %81 : vector<8xf32> to vector<8x1xf32>
    %83 = vector.broadcast %82 : vector<8x1xf32> to vector<8x8xf32>
    %84 = arith.subf %80, %83 : vector<8x8xf32>
    %85 = math.exp %84 : vector<8x8xf32>
    %cst_46 = arith.constant dense<0.000000e+00> : vector<8xf32>
    %86 = vector.multi_reduction <add>, %85, %cst_46 [1] : vector<8x8xf32> to vector<8xf32>
    %87 = vector.shape_cast %86 : vector<8xf32> to vector<8x1xf32>
    %88 = tpu.reciprocal %87 {approx = true} : vector<8x1xf32> -> vector<8x1xf32>
    %89 = vector.broadcast %88 : vector<8x1xf32> to vector<8x8xf32>
    %90 = arith.mulf %85, %89 : vector<8x8xf32>
    %91 = arith.truncf %90 : vector<8x8xf32> to vector<8x8xbf16>
    %cst_47 = arith.constant dense<0.000000e+00> : vector<8x16xf32>
    %92 = tpu.matmul %91, %76, %cst_47 {dimension_numbers = #tpu.dot_dimension_numbers<[1], [0], [0], [1], [0, 0, 1, 1], [], []>} : vector<8x8xbf16>, vector<8x16xbf16>, vector<8x16xf32> -> vector<8x16xf32>
    %93 = tpu.concatenate %70, %92 in 1 : vector<8x16xf32>, vector<8x16xf32> -> vector<8x32xf32>
    %94 = arith.truncf %93 : vector<8x32xf32> to vector<8x32xbf16>
    %cst_48 = arith.constant dense<0.000000e+00> : vector<8x32xf32>
    %95 = tpu.matmul %94, %31, %cst_48 {dimension_numbers = #tpu.dot_dimension_numbers<[1], [0], [0], [1], [0, 0, 1, 1], [], []>} : vector<8x32xbf16>, vector<32x32xbf16>, vector<8x32xf32> -> vector<8x32xf32>
    %96 = vector.broadcast %33 : vector<1x32xf32> to vector<8x32xf32>
    %97 = arith.addf %95, %96 : vector<8x32xf32>
    %98 = arith.addf %25, %97 : vector<8x32xf32>
    %c0_49 = arith.constant 0 : index
    %c0_50 = arith.constant 0 : index
    %c0_51 = arith.constant 0 : index
    %99 = vector.load %arg9[%c0_49, %c0_50, %c0_51] : memref<2x1x32xf32, #tpu.memory_space<vmem>>, vector<1x1x32xf32>
    %100 = vector.shape_cast %99 : vector<1x1x32xf32> to vector<1x32xf32>
    %c0_52 = arith.constant 0 : index
    %c0_53 = arith.constant 0 : index
    %c0_54 = arith.constant 0 : index
    %101 = vector.load %arg10[%c0_52, %c0_53, %c0_54] : memref<2x1x32xf32, #tpu.memory_space<vmem>>, vector<1x1x32xf32>
    %102 = vector.shape_cast %101 : vector<1x1x32xf32> to vector<1x32xf32>
    %cst_55 = arith.constant dense<0.000000e+00> : vector<8xf32>
    %103 = vector.multi_reduction <add>, %98, %cst_55 [1] : vector<8x32xf32> to vector<8xf32>
    %104 = vector.shape_cast %103 : vector<8xf32> to vector<8x1xf32>
    %cst_56 = arith.constant 3.200000e+01 : f32
    %105 = vector.broadcast %cst_56 : f32 to vector<8x1xf32>
    %106 = arith.divf %104, %105 : vector<8x1xf32>
    %107 = vector.broadcast %106 : vector<8x1xf32> to vector<8x32xf32>
    %108 = arith.subf %98, %107 : vector<8x32xf32>
    %109 = arith.mulf %108, %108 : vector<8x32xf32>
    %cst_57 = arith.constant dense<0.000000e+00> : vector<8xf32>
    %110 = vector.multi_reduction <add>, %109, %cst_57 [1] : vector<8x32xf32> to vector<8xf32>
    %111 = vector.shape_cast %110 : vector<8xf32> to vector<8x1xf32>
    %cst_58 = arith.constant 3.200000e+01 : f32
    %112 = vector.broadcast %cst_58 : f32 to vector<8x1xf32>
    %113 = arith.divf %111, %112 : vector<8x1xf32>
    %cst_59 = arith.constant 9.99999996E-13 : f32
    %114 = vector.broadcast %cst_59 : f32 to vector<8x1xf32>
    %115 = arith.addf %113, %114 : vector<8x1xf32>
    %116 = math.rsqrt %115 : vector<8x1xf32>
    %117 = vector.broadcast %116 : vector<8x1xf32> to vector<8x32xf32>
    %118 = arith.mulf %108, %117 : vector<8x32xf32>
    %119 = vector.broadcast %100 : vector<1x32xf32> to vector<8x32xf32>
    %120 = arith.mulf %118, %119 : vector<8x32xf32>
    %121 = vector.broadcast %102 : vector<1x32xf32> to vector<8x32xf32>
    %122 = arith.addf %120, %121 : vector<8x32xf32>
    %123 = arith.truncf %122 : vector<8x32xf32> to vector<8x32xbf16>
    %cst_60 = arith.constant dense<0.000000e+00> : vector<8x64xf32>
    %124 = tpu.matmul %123, %35, %cst_60 {dimension_numbers = #tpu.dot_dimension_numbers<[1], [0], [0], [1], [0, 0, 1, 1], [], []>} : vector<8x32xbf16>, vector<32x64xbf16>, vector<8x64xf32> -> vector<8x64xf32>
    %125 = vector.broadcast %37 : vector<1x64xf32> to vector<8x64xf32>
    %126 = arith.addf %124, %125 : vector<8x64xf32>
    %cst_61 = arith.constant 5.000000e-01 : f32
    %127 = vector.broadcast %cst_61 : f32 to vector<8x64xf32>
    %128 = arith.mulf %127, %126 : vector<8x64xf32>
    %cst_62 = arith.constant 4.471500e-02 : f32
    %129 = vector.broadcast %cst_62 : f32 to vector<8x64xf32>
    %130 = arith.mulf %129, %126 : vector<8x64xf32>
    %131 = arith.mulf %130, %126 : vector<8x64xf32>
    %132 = arith.mulf %131, %126 : vector<8x64xf32>
    %133 = arith.addf %126, %132 : vector<8x64xf32>
    %cst_63 = arith.constant 0.797884583 : f32
    %134 = vector.broadcast %cst_63 : f32 to vector<8x64xf32>
    %135 = arith.mulf %134, %133 : vector<8x64xf32>
    %136 = math.tanh %135 : vector<8x64xf32>
    %cst_64 = arith.constant 1.000000e+00 : f32
    %137 = vector.broadcast %cst_64 : f32 to vector<8x64xf32>
    %138 = arith.addf %137, %136 : vector<8x64xf32>
    %139 = arith.mulf %128, %138 : vector<8x64xf32>
    %140 = arith.truncf %139 : vector<8x64xf32> to vector<8x64xbf16>
    %cst_65 = arith.constant dense<0.000000e+00> : vector<8x32xf32>
    %141 = tpu.matmul %140, %39, %cst_65 {dimension_numbers = #tpu.dot_dimension_numbers<[1], [0], [0], [1], [0, 0, 1, 1], [], []>} : vector<8x64xbf16>, vector<64x32xbf16>, vector<8x32xf32> -> vector<8x32xf32>
    %142 = vector.broadcast %41 : vector<1x32xf32> to vector<8x32xf32>
    %143 = arith.addf %141, %142 : vector<8x32xf32>
    %144 = arith.addf %122, %143 : vector<8x32xf32>
    %c0_66 = arith.constant 0 : index
    %c0_67 = arith.constant 0 : index
    %c0_68 = arith.constant 0 : index
    %145 = vector.load %arg15[%c0_66, %c0_67, %c0_68] : memref<2x1x32xf32, #tpu.memory_space<vmem>>, vector<1x1x32xf32>
    %146 = vector.shape_cast %145 : vector<1x1x32xf32> to vector<1x32xf32>
    %c0_69 = arith.constant 0 : index
    %c0_70 = arith.constant 0 : index
    %c0_71 = arith.constant 0 : index
    %147 = vector.load %arg16[%c0_69, %c0_70, %c0_71] : memref<2x1x32xf32, #tpu.memory_space<vmem>>, vector<1x1x32xf32>
    %148 = vector.shape_cast %147 : vector<1x1x32xf32> to vector<1x32xf32>
    %cst_72 = arith.constant dense<0.000000e+00> : vector<8xf32>
    %149 = vector.multi_reduction <add>, %144, %cst_72 [1] : vector<8x32xf32> to vector<8xf32>
    %150 = vector.shape_cast %149 : vector<8xf32> to vector<8x1xf32>
    %cst_73 = arith.constant 3.200000e+01 : f32
    %151 = vector.broadcast %cst_73 : f32 to vector<8x1xf32>
    %152 = arith.divf %150, %151 : vector<8x1xf32>
    %153 = vector.broadcast %152 : vector<8x1xf32> to vector<8x32xf32>
    %154 = arith.subf %144, %153 : vector<8x32xf32>
    %155 = arith.mulf %154, %154 : vector<8x32xf32>
    %cst_74 = arith.constant dense<0.000000e+00> : vector<8xf32>
    %156 = vector.multi_reduction <add>, %155, %cst_74 [1] : vector<8x32xf32> to vector<8xf32>
    %157 = vector.shape_cast %156 : vector<8xf32> to vector<8x1xf32>
    %cst_75 = arith.constant 3.200000e+01 : f32
    %158 = vector.broadcast %cst_75 : f32 to vector<8x1xf32>
    %159 = arith.divf %157, %158 : vector<8x1xf32>
    %cst_76 = arith.constant 9.99999996E-13 : f32
    %160 = vector.broadcast %cst_76 : f32 to vector<8x1xf32>
    %161 = arith.addf %159, %160 : vector<8x1xf32>
    %162 = math.rsqrt %161 : vector<8x1xf32>
    %163 = vector.broadcast %162 : vector<8x1xf32> to vector<8x32xf32>
    %164 = arith.mulf %154, %163 : vector<8x32xf32>
    %165 = vector.broadcast %146 : vector<1x32xf32> to vector<8x32xf32>
    %166 = arith.mulf %164, %165 : vector<8x32xf32>
    %167 = vector.broadcast %148 : vector<1x32xf32> to vector<8x32xf32>
    %168 = arith.addf %166, %167 : vector<8x32xf32>
    %c1 = arith.constant 1 : index
    %c0_77 = arith.constant 0 : index
    %c0_78 = arith.constant 0 : index
    %169 = vector.load %arg5[%c1, %c0_77, %c0_78] : memref<2x32x384xbf16, #tpu.memory_space<vmem>>, vector<1x32x384xbf16>
    %170 = vector.shape_cast %169 : vector<1x32x384xbf16> to vector<32x384xbf16>
    %c1_79 = arith.constant 1 : index
    %c0_80 = arith.constant 0 : index
    %c0_81 = arith.constant 0 : index
    %171 = vector.load %arg6[%c1_79, %c0_80, %c0_81] : memref<2x1x384xf32, #tpu.memory_space<vmem>>, vector<1x1x384xf32>
    %172 = vector.shape_cast %171 : vector<1x1x384xf32> to vector<1x384xf32>
    %c1_82 = arith.constant 1 : index
    %c0_83 = arith.constant 0 : index
    %c0_84 = arith.constant 0 : index
    %173 = vector.load %arg7[%c1_82, %c0_83, %c0_84] : memref<2x32x32xbf16, #tpu.memory_space<vmem>>, vector<1x32x32xbf16>
    %174 = vector.shape_cast %173 : vector<1x32x32xbf16> to vector<32x32xbf16>
    %c1_85 = arith.constant 1 : index
    %c0_86 = arith.constant 0 : index
    %c0_87 = arith.constant 0 : index
    %175 = vector.load %arg8[%c1_85, %c0_86, %c0_87] : memref<2x1x32xf32, #tpu.memory_space<vmem>>, vector<1x1x32xf32>
    %176 = vector.shape_cast %175 : vector<1x1x32xf32> to vector<1x32xf32>
    %c1_88 = arith.constant 1 : index
    %c0_89 = arith.constant 0 : index
    %c0_90 = arith.constant 0 : index
    %177 = vector.load %arg11[%c1_88, %c0_89, %c0_90] : memref<2x32x64xbf16, #tpu.memory_space<vmem>>, vector<1x32x64xbf16>
    %178 = vector.shape_cast %177 : vector<1x32x64xbf16> to vector<32x64xbf16>
    %c1_91 = arith.constant 1 : index
    %c0_92 = arith.constant 0 : index
    %c0_93 = arith.constant 0 : index
    %179 = vector.load %arg12[%c1_91, %c0_92, %c0_93] : memref<2x1x64xf32, #tpu.memory_space<vmem>>, vector<1x1x64xf32>
    %180 = vector.shape_cast %179 : vector<1x1x64xf32> to vector<1x64xf32>
    %c1_94 = arith.constant 1 : index
    %c0_95 = arith.constant 0 : index
    %c0_96 = arith.constant 0 : index
    %181 = vector.load %arg13[%c1_94, %c0_95, %c0_96] : memref<2x64x32xbf16, #tpu.memory_space<vmem>>, vector<1x64x32xbf16>
    %182 = vector.shape_cast %181 : vector<1x64x32xbf16> to vector<64x32xbf16>
    %c1_97 = arith.constant 1 : index
    %c0_98 = arith.constant 0 : index
    %c0_99 = arith.constant 0 : index
    %183 = vector.load %arg14[%c1_97, %c0_98, %c0_99] : memref<2x1x32xf32, #tpu.memory_space<vmem>>, vector<1x1x32xf32>
    %184 = vector.shape_cast %183 : vector<1x1x32xf32> to vector<1x32xf32>
    %185 = arith.truncf %168 : vector<8x32xf32> to vector<8x32xbf16>
    %cst_100 = arith.constant dense<0.000000e+00> : vector<8x384xf32>
    %186 = tpu.matmul %185, %170, %cst_100 {dimension_numbers = #tpu.dot_dimension_numbers<[1], [0], [0], [1], [0, 0, 1, 1], [], []>} : vector<8x32xbf16>, vector<32x384xbf16>, vector<8x384xf32> -> vector<8x384xf32>
    %187 = vector.broadcast %172 : vector<1x384xf32> to vector<8x384xf32>
    %188 = arith.addf %186, %187 : vector<8x384xf32>
    %189 = vector.extract_strided_slice %188 {offsets = [0, 0], sizes = [8, 32], strides = [1, 1]} : vector<8x384xf32> to vector<8x32xf32>
    %190 = vector.extract_strided_slice %188 {offsets = [0, 128], sizes = [8, 32], strides = [1, 1]} : vector<8x384xf32> to vector<8x32xf32>
    %191 = vector.extract_strided_slice %188 {offsets = [0, 256], sizes = [8, 32], strides = [1, 1]} : vector<8x384xf32> to vector<8x32xf32>
    %192 = vector.extract_strided_slice %189 {offsets = [0, 0], sizes = [8, 16], strides = [1, 1]} : vector<8x32xf32> to vector<8x16xf32>
    %193 = arith.truncf %192 : vector<8x16xf32> to vector<8x16xbf16>
    %194 = vector.extract_strided_slice %190 {offsets = [0, 0], sizes = [8, 16], strides = [1, 1]} : vector<8x32xf32> to vector<8x16xf32>
    %195 = arith.truncf %194 : vector<8x16xf32> to vector<8x16xbf16>
    %196 = vector.extract_strided_slice %191 {offsets = [0, 0], sizes = [8, 16], strides = [1, 1]} : vector<8x32xf32> to vector<8x16xf32>
    %197 = arith.truncf %196 : vector<8x16xf32> to vector<8x16xbf16>
    %cst_101 = arith.constant dense<0.000000e+00> : vector<8x8xf32>
    %198 = tpu.matmul %193, %195, %cst_101 {dimension_numbers = #tpu.dot_dimension_numbers<[1], [1], [0], [0], [0, 0, 1, 0], [], []>} : vector<8x16xbf16>, vector<8x16xbf16>, vector<8x8xf32> -> vector<8x8xf32>
    %cst_102 = arith.constant 2.500000e-01 : f32
    %199 = vector.broadcast %cst_102 : f32 to vector<8x8xf32>
    %200 = arith.mulf %198, %199 : vector<8x8xf32>
    %201 = arith.addf %200, %1 : vector<8x8xf32>
    %cst_103 = arith.constant dense<0xFF800000> : vector<8xf32>
    %202 = vector.multi_reduction <maximumf>, %201, %cst_103 [1] : vector<8x8xf32> to vector<8xf32>
    %203 = vector.shape_cast %202 : vector<8xf32> to vector<8x1xf32>
    %204 = vector.broadcast %203 : vector<8x1xf32> to vector<8x8xf32>
    %205 = arith.subf %201, %204 : vector<8x8xf32>
    %206 = math.exp %205 : vector<8x8xf32>
    %cst_104 = arith.constant dense<0.000000e+00> : vector<8xf32>
    %207 = vector.multi_reduction <add>, %206, %cst_104 [1] : vector<8x8xf32> to vector<8xf32>
    %208 = vector.shape_cast %207 : vector<8xf32> to vector<8x1xf32>
    %209 = tpu.reciprocal %208 {approx = true} : vector<8x1xf32> -> vector<8x1xf32>
    %210 = vector.broadcast %209 : vector<8x1xf32> to vector<8x8xf32>
    %211 = arith.mulf %206, %210 : vector<8x8xf32>
    %212 = arith.truncf %211 : vector<8x8xf32> to vector<8x8xbf16>
    %cst_105 = arith.constant dense<0.000000e+00> : vector<8x16xf32>
    %213 = tpu.matmul %212, %197, %cst_105 {dimension_numbers = #tpu.dot_dimension_numbers<[1], [0], [0], [1], [0, 0, 1, 1], [], []>} : vector<8x8xbf16>, vector<8x16xbf16>, vector<8x16xf32> -> vector<8x16xf32>
    %214 = vector.extract_strided_slice %189 {offsets = [0, 16], sizes = [8, 16], strides = [1, 1]} : vector<8x32xf32> to vector<8x16xf32>
    %215 = arith.truncf %214 : vector<8x16xf32> to vector<8x16xbf16>
    %216 = vector.extract_strided_slice %190 {offsets = [0, 16], sizes = [8, 16], strides = [1, 1]} : vector<8x32xf32> to vector<8x16xf32>
    %217 = arith.truncf %216 : vector<8x16xf32> to vector<8x16xbf16>
    %218 = vector.extract_strided_slice %191 {offsets = [0, 16], sizes = [8, 16], strides = [1, 1]} : vector<8x32xf32> to vector<8x16xf32>
    %219 = arith.truncf %218 : vector<8x16xf32> to vector<8x16xbf16>
    %cst_106 = arith.constant dense<0.000000e+00> : vector<8x8xf32>
    %220 = tpu.matmul %215, %217, %cst_106 {dimension_numbers = #tpu.dot_dimension_numbers<[1], [1], [0], [0], [0, 0, 1, 0], [], []>} : vector<8x16xbf16>, vector<8x16xbf16>, vector<8x8xf32> -> vector<8x8xf32>
    %cst_107 = arith.constant 2.500000e-01 : f32
    %221 = vector.broadcast %cst_107 : f32 to vector<8x8xf32>
    %222 = arith.mulf %220, %221 : vector<8x8xf32>
    %223 = arith.addf %222, %1 : vector<8x8xf32>
    %cst_108 = arith.constant dense<0xFF800000> : vector<8xf32>
    %224 = vector.multi_reduction <maximumf>, %223, %cst_108 [1] : vector<8x8xf32> to vector<8xf32>
    %225 = vector.shape_cast %224 : vector<8xf32> to vector<8x1xf32>
    %226 = vector.broadcast %225 : vector<8x1xf32> to vector<8x8xf32>
    %227 = arith.subf %223, %226 : vector<8x8xf32>
    %228 = math.exp %227 : vector<8x8xf32>
    %cst_109 = arith.constant dense<0.000000e+00> : vector<8xf32>
    %229 = vector.multi_reduction <add>, %228, %cst_109 [1] : vector<8x8xf32> to vector<8xf32>
    %230 = vector.shape_cast %229 : vector<8xf32> to vector<8x1xf32>
    %231 = tpu.reciprocal %230 {approx = true} : vector<8x1xf32> -> vector<8x1xf32>
    %232 = vector.broadcast %231 : vector<8x1xf32> to vector<8x8xf32>
    %233 = arith.mulf %228, %232 : vector<8x8xf32>
    %234 = arith.truncf %233 : vector<8x8xf32> to vector<8x8xbf16>
    %cst_110 = arith.constant dense<0.000000e+00> : vector<8x16xf32>
    %235 = tpu.matmul %234, %219, %cst_110 {dimension_numbers = #tpu.dot_dimension_numbers<[1], [0], [0], [1], [0, 0, 1, 1], [], []>} : vector<8x8xbf16>, vector<8x16xbf16>, vector<8x16xf32> -> vector<8x16xf32>
    %236 = tpu.concatenate %213, %235 in 1 : vector<8x16xf32>, vector<8x16xf32> -> vector<8x32xf32>
    %237 = arith.truncf %236 : vector<8x32xf32> to vector<8x32xbf16>
    %cst_111 = arith.constant dense<0.000000e+00> : vector<8x32xf32>
    %238 = tpu.matmul %237, %174, %cst_111 {dimension_numbers = #tpu.dot_dimension_numbers<[1], [0], [0], [1], [0, 0, 1, 1], [], []>} : vector<8x32xbf16>, vector<32x32xbf16>, vector<8x32xf32> -> vector<8x32xf32>
    %239 = vector.broadcast %176 : vector<1x32xf32> to vector<8x32xf32>
    %240 = arith.addf %238, %239 : vector<8x32xf32>
    %241 = arith.addf %168, %240 : vector<8x32xf32>
    %c1_112 = arith.constant 1 : index
    %c0_113 = arith.constant 0 : index
    %c0_114 = arith.constant 0 : index
    %242 = vector.load %arg9[%c1_112, %c0_113, %c0_114] : memref<2x1x32xf32, #tpu.memory_space<vmem>>, vector<1x1x32xf32>
    %243 = vector.shape_cast %242 : vector<1x1x32xf32> to vector<1x32xf32>
    %c1_115 = arith.constant 1 : index
    %c0_116 = arith.constant 0 : index
    %c0_117 = arith.constant 0 : index
    %244 = vector.load %arg10[%c1_115, %c0_116, %c0_117] : memref<2x1x32xf32, #tpu.memory_space<vmem>>, vector<1x1x32xf32>
    %245 = vector.shape_cast %244 : vector<1x1x32xf32> to vector<1x32xf32>
    %cst_118 = arith.constant dense<0.000000e+00> : vector<8xf32>
    %246 = vector.multi_reduction <add>, %241, %cst_118 [1] : vector<8x32xf32> to vector<8xf32>
    %247 = vector.shape_cast %246 : vector<8xf32> to vector<8x1xf32>
    %cst_119 = arith.constant 3.200000e+01 : f32
    %248 = vector.broadcast %cst_119 : f32 to vector<8x1xf32>
    %249 = arith.divf %247, %248 : vector<8x1xf32>
    %250 = vector.broadcast %249 : vector<8x1xf32> to vector<8x32xf32>
    %251 = arith.subf %241, %250 : vector<8x32xf32>
    %252 = arith.mulf %251, %251 : vector<8x32xf32>
    %cst_120 = arith.constant dense<0.000000e+00> : vector<8xf32>
    %253 = vector.multi_reduction <add>, %252, %cst_120 [1] : vector<8x32xf32> to vector<8xf32>
    %254 = vector.shape_cast %253 : vector<8xf32> to vector<8x1xf32>
    %cst_121 = arith.constant 3.200000e+01 : f32
    %255 = vector.broadcast %cst_121 : f32 to vector<8x1xf32>
    %256 = arith.divf %254, %255 : vector<8x1xf32>
    %cst_122 = arith.constant 9.99999996E-13 : f32
    %257 = vector.broadcast %cst_122 : f32 to vector<8x1xf32>
    %258 = arith.addf %256, %257 : vector<8x1xf32>
    %259 = math.rsqrt %258 : vector<8x1xf32>
    %260 = vector.broadcast %259 : vector<8x1xf32> to vector<8x32xf32>
    %261 = arith.mulf %251, %260 : vector<8x32xf32>
    %262 = vector.broadcast %243 : vector<1x32xf32> to vector<8x32xf32>
    %263 = arith.mulf %261, %262 : vector<8x32xf32>
    %264 = vector.broadcast %245 : vector<1x32xf32> to vector<8x32xf32>
    %265 = arith.addf %263, %264 : vector<8x32xf32>
    %266 = arith.truncf %265 : vector<8x32xf32> to vector<8x32xbf16>
    %cst_123 = arith.constant dense<0.000000e+00> : vector<8x64xf32>
    %267 = tpu.matmul %266, %178, %cst_123 {dimension_numbers = #tpu.dot_dimension_numbers<[1], [0], [0], [1], [0, 0, 1, 1], [], []>} : vector<8x32xbf16>, vector<32x64xbf16>, vector<8x64xf32> -> vector<8x64xf32>
    %268 = vector.broadcast %180 : vector<1x64xf32> to vector<8x64xf32>
    %269 = arith.addf %267, %268 : vector<8x64xf32>
    %cst_124 = arith.constant 5.000000e-01 : f32
    %270 = vector.broadcast %cst_124 : f32 to vector<8x64xf32>
    %271 = arith.mulf %270, %269 : vector<8x64xf32>
    %cst_125 = arith.constant 4.471500e-02 : f32
    %272 = vector.broadcast %cst_125 : f32 to vector<8x64xf32>
    %273 = arith.mulf %272, %269 : vector<8x64xf32>
    %274 = arith.mulf %273, %269 : vector<8x64xf32>
    %275 = arith.mulf %274, %269 : vector<8x64xf32>
    %276 = arith.addf %269, %275 : vector<8x64xf32>
    %cst_126 = arith.constant 0.797884583 : f32
    %277 = vector.broadcast %cst_126 : f32 to vector<8x64xf32>
    %278 = arith.mulf %277, %276 : vector<8x64xf32>
    %279 = math.tanh %278 : vector<8x64xf32>
    %cst_127 = arith.constant 1.000000e+00 : f32
    %280 = vector.broadcast %cst_127 : f32 to vector<8x64xf32>
    %281 = arith.addf %280, %279 : vector<8x64xf32>
    %282 = arith.mulf %271, %281 : vector<8x64xf32>
    %283 = arith.truncf %282 : vector<8x64xf32> to vector<8x64xbf16>
    %cst_128 = arith.constant dense<0.000000e+00> : vector<8x32xf32>
    %284 = tpu.matmul %283, %182, %cst_128 {dimension_numbers = #tpu.dot_dimension_numbers<[1], [0], [0], [1], [0, 0, 1, 1], [], []>} : vector<8x64xbf16>, vector<64x32xbf16>, vector<8x32xf32> -> vector<8x32xf32>
    %285 = vector.broadcast %184 : vector<1x32xf32> to vector<8x32xf32>
    %286 = arith.addf %284, %285 : vector<8x32xf32>
    %287 = arith.addf %265, %286 : vector<8x32xf32>
    %c1_129 = arith.constant 1 : index
    %c0_130 = arith.constant 0 : index
    %c0_131 = arith.constant 0 : index
    %288 = vector.load %arg15[%c1_129, %c0_130, %c0_131] : memref<2x1x32xf32, #tpu.memory_space<vmem>>, vector<1x1x32xf32>
    %289 = vector.shape_cast %288 : vector<1x1x32xf32> to vector<1x32xf32>
    %c1_132 = arith.constant 1 : index
    %c0_133 = arith.constant 0 : index
    %c0_134 = arith.constant 0 : index
    %290 = vector.load %arg16[%c1_132, %c0_133, %c0_134] : memref<2x1x32xf32, #tpu.memory_space<vmem>>, vector<1x1x32xf32>
    %291 = vector.shape_cast %290 : vector<1x1x32xf32> to vector<1x32xf32>
    %cst_135 = arith.constant dense<0.000000e+00> : vector<8xf32>
    %292 = vector.multi_reduction <add>, %287, %cst_135 [1] : vector<8x32xf32> to vector<8xf32>
    %293 = vector.shape_cast %292 : vector<8xf32> to vector<8x1xf32>
    %cst_136 = arith.constant 3.200000e+01 : f32
    %294 = vector.broadcast %cst_136 : f32 to vector<8x1xf32>
    %295 = arith.divf %293, %294 : vector<8x1xf32>
    %296 = vector.broadcast %295 : vector<8x1xf32> to vector<8x32xf32>
    %297 = arith.subf %287, %296 : vector<8x32xf32>
    %298 = arith.mulf %297, %297 : vector<8x32xf32>
    %cst_137 = arith.constant dense<0.000000e+00> : vector<8xf32>
    %299 = vector.multi_reduction <add>, %298, %cst_137 [1] : vector<8x32xf32> to vector<8xf32>
    %300 = vector.shape_cast %299 : vector<8xf32> to vector<8x1xf32>
    %cst_138 = arith.constant 3.200000e+01 : f32
    %301 = vector.broadcast %cst_138 : f32 to vector<8x1xf32>
    %302 = arith.divf %300, %301 : vector<8x1xf32>
    %cst_139 = arith.constant 9.99999996E-13 : f32
    %303 = vector.broadcast %cst_139 : f32 to vector<8x1xf32>
    %304 = arith.addf %302, %303 : vector<8x1xf32>
    %305 = math.rsqrt %304 : vector<8x1xf32>
    %306 = vector.broadcast %305 : vector<8x1xf32> to vector<8x32xf32>
    %307 = arith.mulf %297, %306 : vector<8x32xf32>
    %308 = vector.broadcast %289 : vector<1x32xf32> to vector<8x32xf32>
    %309 = arith.mulf %307, %308 : vector<8x32xf32>
    %310 = vector.broadcast %291 : vector<1x32xf32> to vector<8x32xf32>
    %311 = arith.addf %309, %310 : vector<8x32xf32>
    %c0_140 = arith.constant 0 : index
    %c0_141 = arith.constant 0 : index
    %312 = vector.load %arg17[%c0_140, %c0_141] : memref<32x128xf32, #tpu.memory_space<vmem>>, vector<32x128xf32>
    %cst_142 = arith.constant dense<0.000000e+00> : vector<8x128xf32>
    %313 = tpu.matmul %311, %312, %cst_142 {dimension_numbers = #tpu.dot_dimension_numbers<[1], [0], [0], [1], [0, 0, 1, 1], [], []>} : vector<8x32xf32>, vector<32x128xf32>, vector<8x128xf32> -> vector<8x128xf32>
    %c0_143 = arith.constant 0 : index
    %c0_144 = arith.constant 0 : index
    %314 = vector.load %arg18[%c0_143, %c0_144] : memref<1x128xf32, #tpu.memory_space<vmem>>, vector<1x128xf32>
    %315 = vector.broadcast %314 : vector<1x128xf32> to vector<8x128xf32>
    %316 = arith.addf %313, %315 : vector<8x128xf32>
    %317 = math.tanh %316 : vector<8x128xf32>
    %c0_145 = arith.constant 0 : index
    %c0_146 = arith.constant 0 : index
    %c0_147 = arith.constant 0 : index
    %318 = vector.load %arg21[%c0_145, %c0_146, %c0_147] : memref<1x8x128xf32, #tpu.memory_space<vmem>>, vector<1x8x128xf32>
    %319 = vector.shape_cast %318 : vector<1x8x128xf32> to vector<8x128xf32>
    %320 = vector.shape_cast %317 : vector<8x128xf32> to vector<1x8x128xf32>
    tpu.vector_store %arg21[%c0_145, %c0_146, %c0_147], %320 {strides = array<i32>} : memref<1x8x128xf32, #tpu.memory_space<vmem>>, vector<1x8x128xf32>,
    %c0_148 = arith.constant 0 : index
    %c0_149 = arith.constant 0 : index
    %321 = vector.load %arg19[%c0_148, %c0_149] : memref<128x128xf32, #tpu.memory_space<vmem>>, vector<128x128xf32>
    %cst_150 = arith.constant dense<0.000000e+00> : vector<8x128xf32>
    %322 = tpu.matmul %317, %321, %cst_150 {dimension_numbers = #tpu.dot_dimension_numbers<[1], [0], [0], [1], [0, 0, 1, 1], [], []>} : vector<8x128xf32>, vector<128x128xf32>, vector<8x128xf32> -> vector<8x128xf32>
    %c0_151 = arith.constant 0 : index
    %c0_152 = arith.constant 0 : index
    %323 = vector.load %arg20[%c0_151, %c0_152] : memref<1x128xf32, #tpu.memory_space<vmem>>, vector<1x128xf32>
    %324 = vector.broadcast %323 : vector<1x128xf32> to vector<8x128xf32>
    %325 = arith.addf %322, %324 : vector<8x128xf32>
    %c0_153 = arith.constant 0 : index
    %c0_154 = arith.constant 0 : index
    %c0_155 = arith.constant 0 : index
    %326 = vector.load %arg22[%c0_153, %c0_154, %c0_155] : memref<1x8x128xf32, #tpu.memory_space<vmem>>, vector<1x8x128xf32>
    %327 = vector.shape_cast %326 : vector<1x8x128xf32> to vector<8x128xf32>
    %328 = vector.shape_cast %325 : vector<8x128xf32> to vector<1x8x128xf32>
    tpu.vector_store %arg22[%c0_153, %c0_154, %c0_155], %328 {strides = array<i32>} : memref<1x8x128xf32, #tpu.memory_space<vmem>>, vector<1x8x128xf32>,
    return
  }
  func.func @transform_0(%arg0: i32) -> (i32, i32, i32) {
    %c0_i32 = arith.constant 0 : i32
    %c0_i32_0 = arith.constant 0 : i32
    %c0_i32_1 = arith.constant 0 : i32
    return %arg0, %c0_i32, %c0_i32_0 : i32, i32, i32
  }
  func.func @transform_1(%arg0: i32) -> (i32, i32, i32) {
    %c0_i32 = arith.constant 0 : i32
    %c0_i32_0 = arith.constant 0 : i32
    %c0_i32_1 = arith.constant 0 : i32
    return %arg0, %c0_i32, %c0_i32_0 : i32, i32, i32
  }
  func.func @transform_2(%arg0: i32) -> (i32, i32) {
    %c0_i32 = arith.constant 0 : i32
    %c0_i32_0 = arith.constant 0 : i32
    %c0_i32_1 = arith.constant 0 : i32
    return %c0_i32, %c0_i32_0 : i32, i32
  }
  func.func @transform_3(%arg0: i32) -> (i32, i32) {
    %c0_i32 = arith.constant 0 : i32
    %c0_i32_0 = arith.constant 0 : i32
    %c0_i32_1 = arith.constant 0 : i32
    return %c0_i32, %c0_i32_0 : i32, i32
  }
  func.func @transform_4(%arg0: i32) -> (i32, i32, i32) {
    %c0_i32 = arith.constant 0 : i32
    %c0_i32_0 = arith.constant 0 : i32
    %c0_i32_1 = arith.constant 0 : i32
    %c0_i32_2 = arith.constant 0 : i32
    return %c0_i32, %c0_i32_0, %c0_i32_1 : i32, i32, i32
  }
  func.func @transform_5(%arg0: i32) -> (i32, i32, i32) {
    %c0_i32 = arith.constant 0 : i32
    %c0_i32_0 = arith.constant 0 : i32
    %c0_i32_1 = arith.constant 0 : i32
    %c0_i32_2 = arith.constant 0 : i32
    return %c0_i32, %c0_i32_0, %c0_i32_1 : i32, i32, i32
  }
  func.func @transform_6(%arg0: i32) -> (i32, i32, i32) {
    %c0_i32 = arith.constant 0 : i32
    %c0_i32_0 = arith.constant 0 : i32
    %c0_i32_1 = arith.constant 0 : i32
    %c0_i32_2 = arith.constant 0 : i32
    return %c0_i32, %c0_i32_0, %c0_i32_1 : i32, i32, i32
  }
  func.func @transform_7(%arg0: i32) -> (i32, i32, i32) {
    %c0_i32 = arith.constant 0 : i32
    %c0_i32_0 = arith.constant 0 : i32
    %c0_i32_1 = arith.constant 0 : i32
    %c0_i32_2 = arith.constant 0 : i32
    return %c0_i32, %c0_i32_0, %c0_i32_1 : i32, i32, i32
  }
  func.func @transform_8(%arg0: i32) -> (i32, i32, i32) {
    %c0_i32 = arith.constant 0 : i32
    %c0_i32_0 = arith.constant 0 : i32
    %c0_i32_1 = arith.constant 0 : i32
    %c0_i32_2 = arith.constant 0 : i32
    return %c0_i32, %c0_i32_0, %c0_i32_1 : i32, i32, i32
  }
  func.func @transform_9(%arg0: i32) -> (i32, i32, i32) {
    %c0_i32 = arith.constant 0 : i32
    %c0_i32_0 = arith.constant 0 : i32
    %c0_i32_1 = arith.constant 0 : i32
    %c0_i32_2 = arith.constant 0 : i32
    return %c0_i32, %c0_i32_0, %c0_i32_1 : i32, i32, i32
  }
  func.func @transform_10(%arg0: i32) -> (i32, i32, i32) {
    %c0_i32 = arith.constant 0 : i32
    %c0_i32_0 = arith.constant 0 : i32
    %c0_i32_1 = arith.constant 0 : i32
    %c0_i32_2 = arith.constant 0 : i32
    return %c0_i32, %c0_i32_0, %c0_i32_1 : i32, i32, i32
  }
  func.func @transform_11(%arg0: i32) -> (i32, i32, i32) {
    %c0_i32 = arith.constant 0 : i32
    %c0_i32_0 = arith.constant 0 : i32
    %c0_i32_1 = arith.constant 0 : i32
    %c0_i32_2 = arith.constant 0 : i32
    return %c0_i32, %c0_i32_0, %c0_i32_1 : i32, i32, i32
  }
  func.func @transform_12(%arg0: i32) -> (i32, i32, i32) {
    %c0_i32 = arith.constant 0 : i32
    %c0_i32_0 = arith.constant 0 : i32
    %c0_i32_1 = arith.constant 0 : i32
    %c0_i32_2 = arith.constant 0 : i32
    return %c0_i32, %c0_i32_0, %c0_i32_1 : i32, i32, i32
  }
  func.func @transform_13(%arg0: i32) -> (i32, i32, i32) {
    %c0_i32 = arith.constant 0 : i32
    %c0_i32_0 = arith.constant 0 : i32
    %c0_i32_1 = arith.constant 0 : i32
    %c0_i32_2 = arith.constant 0 : i32
    return %c0_i32, %c0_i32_0, %c0_i32_1 : i32, i32, i32
  }
  func.func @transform_14(%arg0: i32) -> (i32, i32, i32) {
    %c0_i32 = arith.constant 0 : i32
    %c0_i32_0 = arith.constant 0 : i32
    %c0_i32_1 = arith.constant 0 : i32
    %c0_i32_2 = arith.constant 0 : i32
    return %c0_i32, %c0_i32_0, %c0_i32_1 : i32, i32, i32
  }
  func.func @transform_15(%arg0: i32) -> (i32, i32, i32) {
    %c0_i32 = arith.constant 0 : i32
    %c0_i32_0 = arith.constant 0 : i32
    %c0_i32_1 = arith.constant 0 : i32
    %c0_i32_2 = arith.constant 0 : i32
    return %c0_i32, %c0_i32_0, %c0_i32_1 : i32, i32, i32
  }
  func.func @transform_16(%arg0: i32) -> (i32, i32) {
    %c0_i32 = arith.constant 0 : i32
    %c0_i32_0 = arith.constant 0 : i32
    %c0_i32_1 = arith.constant 0 : i32
    return %c0_i32, %c0_i32_0 : i32, i32
  }
  func.func @transform_17(%arg0: i32) -> (i32, i32) {
    %c0_i32 = arith.constant 0 : i32
    %c0_i32_0 = arith.constant 0 : i32
    %c0_i32_1 = arith.constant 0 : i32
    return %c0_i32, %c0_i32_0 : i32, i32
  }
  func.func @transform_18(%arg0: i32) -> (i32, i32) {
    %c0_i32 = arith.constant 0 : i32
    %c0_i32_0 = arith.constant 0 : i32
    %c0_i32_1 = arith.constant 0 : i32
    return %c0_i32, %c0_i32_0 : i32, i32
  }
  func.func @transform_19(%arg0: i32) -> (i32, i32) {
    %c0_i32 = arith.constant 0 : i32
    %c0_i32_0 = arith.constant 0 : i32
    %c0_i32_1 = arith.constant 0 : i32
    return %c0_i32, %c0_i32_0 : i32, i32
  }
  func.func @transform_20(%arg0: i32) -> (i32, i32, i32) {
    %c0_i32 = arith.constant 0 : i32
    %c0_i32_0 = arith.constant 0 : i32
    %c0_i32_1 = arith.constant 0 : i32
    return %arg0, %c0_i32, %c0_i32_0 : i32, i32, i32
  }
  func.func @transform_21(%arg0: i32) -> (i32, i32, i32) {
    %c0_i32 = arith.constant 0 : i32
    %c0_i32_0 = arith.constant 0 : i32
    %c0_i32_1 = arith.constant 0 : i32
    return %arg0, %c0_i32, %c0_i32_0 : i32, i32, i32
  }
}

</mosaic_0001>

<bundles_post_ra>
// kernel: span_classifier_forward.1
= control target key start
LH: loop header
LB: loop body
LE: loop exit
PB: predicated region body
PF: predicated region fallthrough
CT: control target
= control target key end

     0   :  { %s3267_s0 = inlined_call_operand.vmem [shape: f32[2,8,32], index: 0, kind: input, shape index: {}]   ;;  %s3268_s1 = inlined_call_operand.vmem [shape: f32[2,8,8], index: 1, kind: input, shape index: {}]   ;;  %s3269_s2 = inlined_call_operand.vmem [shape: f32[1,32], index: 2, kind: input, shape index: {}]   ;;  %s3270_s3 = inlined_call_operand.vmem [shape: f32[1,32], index: 3, kind: input, shape index: {}]   ;;  %s3271_s4 = inlined_call_operand.vmem [shape: bf16[2,32,384], index: 4, kind: input, shape index: {}]   ;;  %s3272_s5 = inlined_call_operand.vmem [shape: f32[2,1,384], index: 5, kind: input, shape index: {}]   ;;  %s3273_s6 = inlined_call_operand.vmem [shape: bf16[2,32,32], index: 6, kind: input, shape index: {}]   ;;  %s3274_s7 = inlined_call_operand.vmem [shape: f32[2,1,32], index: 7, kind: input, shape index: {}]   ;;  %s3275_s8 = inlined_call_operand.vmem [shape: f32[2,1,32], index: 8, kind: input, shape index: {}]   ;;  %s3276_s9 = inlined_call_operand.vmem [shape: f32[2,1,32], index: 9, kind: input, shape index: {}]   ;;  %s3277_s10 = inlined_call_operand.vmem [shape: bf16[2,32,64], index: 10, kind: input, shape index: {}]   ;;  %s3278_s11 = inlined_call_operand.vmem [shape: f32[2,1,64], index: 11, kind: input, shape index: {}]   ;;  %s3279_s12 = inlined_call_operand.vmem [shape: bf16[2,64,32], index: 12, kind: input, shape index: {}]   ;;  %s3280_s13 = inlined_call_operand.vmem [shape: f32[2,1,32], index: 13, kind: input, shape index: {}]   ;;  %s3281_s14 = inlined_call_operand.vmem [shape: f32[2,1,32], index: 14, kind: input, shape index: {}]   ;;  %s3282_s15 = inlined_call_operand.vmem [shape: f32[2,1,32], index: 15, kind: input, shape index: {}]   ;;  %s3283_s16 = inlined_call_operand.vmem [shape: f32[32,128], index: 16, kind: input, shape index: {}]   ;;  %s3284_s17 = inlined_call_operand.vmem [shape: f32[1,128], index: 17, kind: input, shape index: {}]   ;;  %s3285_s18 = inlined_call_operand.vmem [shape: f32[128,128], index: 18, kind: input, shape index: {}]   ;;  %s3286_s19 = inlined_call_operand.vmem [shape: f32[1,128], index: 19, kind: input, shape index: {}]   ;;  %s3287_s20 = inlined_call_operand.vmem [shape: f32[2,8,128], index: 20, kind: output, shape index: {0}]   ;;  %s3288_s21 = inlined_call_operand.vmem [shape: f32[2,8,128], index: 21, kind: output, shape index: {1}]  }
   0x1   :  { %3291 = sst [smem:[#allocation2_spill]] %s3267_s0 }
   0x2   :  { %3292 = sst [smem:[#allocation3_spill]] %s3268_s1 }
   0x3   :  { %3293 = sst [smem:[#allocation4_spill]] %s3269_s2  ;;  %s2860_s2 = smov 0  }
   0x4   :  { %3294 = sst [smem:[#allocation5_spill]] %s3270_s3 }
   0x5   :  { %3295 = sst [smem:[#allocation6_spill]] %s3271_s4 }
   0x6   :  { %3296 = sst [smem:[#allocation7_spill]] %s3272_s5 }
   0x7 LB: > { %s2320_s25 = sadd.s32 4294967295, %s2743_s2   ;;  %p2324_p0 = scmp.ge.s32.totalorder %s2743_s2, 1  ;;  %s2743_s2 = sphi %s2860_s2, %s32_s2  }
   0x8   : > { %p598_p1 = scmp.lt.s32.totalorder %s2743_s2, 3 }
   0xa   : > { %p599_p2 = pnand %p2324_p0, %p598_p1 }
   0xb   : > { %p664_p3 = scmp.lt.s32.totalorder (!%p599_p2), %s2320_s25, 1  ;;  %s3297_s28 = sld [smem:[#allocation2_spill]] (!%p599_p2) }
   0xc   : > { %602 = sbr.rel (%p599_p2) target bundleno = 5500 (0x157c), region = 100  ;;  %s3298_s30 = sld [smem:[#allocation6_spill]] (!%p599_p2) }
   0xd   : > { %s3300_s4 = sld [smem:[#allocation5_spill]] (!%p599_p2)  ;;  %s2748_s3 = smov (!%p599_p2), 112  }
   0xe   : > { %s3301_s27 = sld [smem:[#allocation7_spill]] (!%p599_p2)  ;;  %s2749_s24 = smov (!%p599_p2), 16  }
   0xf   : > { %s3302_s0 = sld [smem:[#allocation3_spill]] (!%p599_p2) }
  0x11   : > { %vm685_vm0 = vcmask 261120   ;;  %s3304_s25 = smov (!%p664_p3, %s2320_s25), 1  ;;  %v2745_v10 = vmov 0   ;;  %v2746_v12 = vmov 0.0   ;;  %vm2747_vm1 = vmmov 0  }
  0x12   : > { %s2868_s26 = sshll.u32 %s3304_s25, 3  ;;  %v2673_v7 = vld [vmem:[%s3298_s30 + $0x1c] ss:$12 sps:$4 sm:$0xff]   ;;  %v2675_v8 = vld [vmem:[%s3298_s30 + $0x18] ss:$12 sps:$4 sm:$0xff]   ;;  %826 = vmatprep.mubr.bf16.mxu0 %v2745_v10  ;;  %2508 = vmatprep.subr.bf16.mxu1 %v2746_v12  ;;  %v744_v25 = vlaneseq  ;;  %vm878_vm2 = vcmask 130048  }
  0x13   : > { %s667_s29 = scalar_lea.vmem %s3297_s28, %s2868_s26  ;;  %v2676_v9 = vld [vmem:[%s3298_s30 + $0x4] ss:$12 sps:$4 sm:$0xff]   ;;  %806 = vmatprep.subr.bf16.mxu0 %v2673_v7  ;;  %v2678_v11 = vld [vmem:[%s3298_s30] ss:$12 sps:$4 sm:$0xff]   ;;  %2510 = vmatprep.mubr.msk.bf16.mxu1 %vm2747_vm1, %v2746_v12  ;;  %s3299_s28 = sld [smem:[#allocation4_spill]]  ;;  %vm943_vm3 = vcmask 1043456  }
  0x14   : > { %v682_v0 = vld [vmem:[%s667_s29] sm:$0xff]  ;;  %807 = vmatpush1.bf16.msra.mxu0 %v2675_v8  ;;  %v2680_v24 = vld [vmem:[%s3298_s30 + $0x8] ss:$12 sps:$4 sm:$0xff]   ;;  %v2917_v26 = vshrl.u32 %v744_v25, 7  ;;  %vm927_vm4 = vcmask 64512   ;;  %vm1301_vm5 = vcmask 523264   ;;  %s679_s5 = scalar_lea.vmem %s3288_s21, %s2868_s26 }
  0x15   : > { %v686_v1 = vsel %vm685_vm0, %v682_v0, 0.0  ;;  %808 = vmatprep.subr.bf16.mxu0 %v2676_v9  ;;  %v2330_v19 = vld [vmem:[%s3300_s4] ss:$0 sm:$0xff]  ;;  %s671_s4 = scalar_lea.vmem %s3302_s0, %s2868_s26 }
  0x16   : > { %687 = vadd.xlane.f32.xlu0 %v686_v1  ;;  %v2679_v22 = vld [vmem:[%s3298_s30 + $0x20] ss:$12 sps:$4 sm:$0xff]   ;;  %v750_v27 = vsub.s32 1, %v2917_v26  ;;  %v746_v28 = vsub.s32 0, %v2917_v26  ;;  %v754_v33 = vsub.s32 2, %v2917_v26 }
  0x17   : > { %v722_v29 = vld [vmem:[%s3301_s27] sm:$0x7] }
  0x18   : > { %809 = vmatpush1.bf16.msra.mxu0 %v2678_v11  ;;  %v751_v30 = vrot.slane %v722_v29, %v750_v27  ;;  %v747_v32 = vrot.slane %v722_v29, %v746_v28  ;;  %v755_v39 = vrot.slane %v722_v29, %v754_v33  ;;  %v2949_v54 = vld [vmem:[%s671_s4] sm:$0xff] }
  0x19   : > { %2494 = vmatprep.subr.bf16.mxu0 %v2746_v12  ;;  %v2329_v17 = vld [vmem:[%s3299_s28] ss:$0 sm:$0xff]  ;;  %s675_s28 = scalar_lea.vmem %s3287_s20, %s2868_s26 }
  0x9f   : > { %v688_v2 = vpop.xlane.xlu0 %687 }
  0xa0   : > { %v690_v3 = vmul.f32 0.03125, %v688_v2 }
  0xa2   : > { %v691_v4 = vsub.f32 %v682_v0, %v690_v3 }
  0xa4   : > { %v692_v5 = vmul.f32 %v691_v4, %v691_v4 }
  0xa6   : > { %v693_v6 = vsel %vm685_vm0, %v692_v5, 0.0 }
  0xa7   : > { %694 = vadd.xlane.f32.xlu0 %v693_v6 }
 0x130   : > { %v695_v13 = vpop.xlane.xlu0 %694 }
 0x131   : > { %v696_v14 = vmul.f32 0.03125, %v695_v13 }
 0x133   : > { %v697_v15 = vadd.f32 1e-12, %v696_v14 }
 0x135   : > { %2705 = vrsqrt.f32 %v697_v15 }
 0x142   : > { %v2706_v16 = vpop.eup %2705 }
 0x143   : > { %v699_v18 = vmul.f32 %v2706_v16, %v691_v4 }
 0x145   : > { %v706_v20 = vmul.f32 %v2329_v17, %v699_v18 }
 0x147   : > { %v2899_v21 = vadd.f32 %v2330_v19, %v706_v20 }
 0x149   : > { %v742_v23 = vpack.c.bf16 %v2899_v21, %v2899_v21 }
 0x14b   : > { %2337 = vmatmul.mubr.msk.bf16.vlgmr.msra.gmra.mxu0 %vm685_vm0, %v742_v23 }
 0x14c   : > { %2495 = vmatpush3.bf16.msra.mxu0 %v2679_v22  ;;  %2498 = vmatprep.mubr.msk.bf16.mxu0 %vm2747_vm1, %v2746_v12 }
 0x14d   : > { %2496 = vmatprep.subr.bf16.mxu0 %v2746_v12 }
 0x150   : > { %2497 = vmatpush3.bf16.msra.mxu0 %v2680_v24 }
 0x151   : > { %2502 = vmatprep.subr.bf16.mxu0 %v2746_v12 }
 0x153   : > { %2499 = vmatmul.mubr.msk.bf16.vlgmr.msra.gmra.mxu0 %vm685_vm0, %v742_v23 }
 0x154   : > { %2504 = vmatprep.mubr.msk.bf16.mxu0 %vm2747_vm1, %v2746_v12 }
 0x20b   : > { %v828_v31 = vpop.f32.mrf.mxu0 }
 0x20c   : > { %v829_v37 = vadd.f32 %v828_v31, %v747_v32 }
 0x20d   : > { %v830_v34 = vpop.f32.mrf.mxu0 }
 0x20e   : > { %v831_v35 = vadd.f32 %v830_v34, %v751_v30  ;;  %v875_v43 = vpack.c.bf16 %v829_v37, %v829_v37  ;;  %v2681_v30 = vld [vmem:[%s3273_s6 + $0x8] sm:$0xff]  }
 0x20f   : > { %v832_v36 = vpop.f32.mrf.mxu0 }
 0x210   : > { %v876_v38 = vpack.c.bf16 %v831_v35, %v831_v35  ;;  %v2682_v36 = vld [vmem:[%s3273_s6] sm:$0xff]  }
 0x211   : > { %v833_v40 = vpop.f32.mrf.mxu0 }
 0x212   : > { %v883_v41 = vsel %vm878_vm2, %v876_v38, 0  ;;  %991 = vrot.lane.b32.xlu1 %v876_v38, %s2748_s3 }
 0x213   : > { %v869_v42 = vpop.f32.mrf.mxu0  ;;  %2503 = vmatpush3.bf16.xpose.msra.mxu0 %v883_v41 }
 0x214   : > { %v870_v44 = vadd.f32 %v869_v42, %v755_v39  ;;  %2514 = vmatprep.subr.bf16.mxu0 %v2746_v12 }
 0x215   : > { %v2500_v45 = vpop.f32.mrf.mxu0 }
 0x216   : > { %v877_v46 = vpack.c.bf16 %v870_v44, %v870_v44  ;;  %988 = vrot.lane.b32.xlu1 %v875_v43, %s2748_s3  ;;  %v2343_v44 = vld [vmem:[%s3274_s7] ss:$0 sm:$0xff] }
 0x217   : > { %v872_v47 = vpop.f32.mrf.mxu0 }
 0x218   : > { %v945_v48 = vsel %vm943_vm3, %v877_v46, 0 }
 0x219   : > { %v2501_v49 = vpop.f32.mrf.mxu0  ;;  %2509 = vmatpush3.bf16.msra.mxu1 %v945_v48 }
 0x21a   : > { %2505 = vmatmul.mubr.msk.bf16.vlgmr.msra.gmra.mxu0 %vm878_vm2, %v875_v43  ;;  %2520 = vmatprep.subr.bf16.mxu1 %v2746_v12 }
 0x21b   : > { %2516 = vmatprep.mubr.msk.bf16.mxu0 %vm2747_vm1, %v2746_v12 }
 0x284   : > { %v992_v50 = vpop.permute.xlu1 %991 }
 0x285   : > { %v997_v51 = vsel %vm878_vm2, %v992_v50, 0 }
 0x286   : > { %2515 = vmatpush3.bf16.xpose.msra.mxu0 %v997_v51 }
 0x287   : > { %2526 = vmatprep.subr.bf16.mxu0 %v2746_v12 }
 0x288   : > { %v989_v52 = vpop.permute.xlu1 %988 }
 0x28d   : > { %2517 = vmatmul.mubr.msk.bf16.vlgmr.msra.gmra.mxu0 %vm878_vm2, %v989_v52 }
 0x28e   : > { %2530 = vmatprep.mubr.msk.bf16.mxu0 %vm2747_vm1, %v2746_v12  ;;  %2527 = vmatpush3.bf16.msra.mxu0 %v2681_v30  ;;  %v2353_v30 = vld [vmem:[%s3280_s13] ss:$0 sm:$0xff] }
 0x28f   : > { %2528 = vmatprep.subr.bf16.mxu0 %v2746_v12 }
 0x292   : > { %2529 = vmatpush3.bf16.msra.mxu0 %v2682_v36 }
 0x293   : > { %2542 = vmatprep.subr.bf16.mxu0 %v2746_v12 }
 0x2da   : > { %v919_v53 = vpop.f32.mrf.mxu0 }
 0x2db   : > { %v925_v55 = vmul.f32 0.25, %v919_v53 }
 0x2dc   : > { %v2506_v56 = vpop.f32.mrf.mxu0 }
 0x2dd   : > { %v926_v57 = vadd.f32 %v925_v55, %v2949_v54 }
 0x2de   : > { %v922_v58 = vpop.f32.mrf.mxu0 }
 0x2df   : > { %v928_v59 = vsel %vm927_vm4, %v926_v57, -inf  ;;  %v2683_v58 = vld [vmem:[%s3277_s10 + $0x8] sm:$0xff]  }
 0x2e0   : > { %929 = vmax.xlane.f32.xlu0 %v928_v59  ;;  %v2507_v60 = vpop.f32.mrf.mxu0 }
 0x34d   : > { %v1033_v61 = vpop.f32.mrf.mxu0 }
 0x34e   : > { %v1039_v62 = vmul.f32 0.25, %v1033_v61 }
 0x34f   : > { %v2518_v63 = vpop.f32.mrf.mxu0 }
 0x350   : > { %v1040_v0 = vadd.f32 %v1039_v62, %v2949_v54  ;;  %v2347_v63 = vld [vmem:[%s3275_s8] ss:$0 sm:$0xff] }
 0x351   : > { %v1036_v1 = vpop.f32.mrf.mxu0 }
 0x352   : > { %v1041_v2 = vsel %vm927_vm4, %v1040_v0, -inf  ;;  %v2348_v1 = vld [vmem:[%s3276_s9] ss:$0 sm:$0xff] }
 0x353   : > { %1042 = vmax.xlane.f32.xlu1 %v1041_v2  ;;  %v2519_v3 = vpop.f32.mrf.mxu0 }
 0x369   : > { %v930_v4 = vpop.xlane.xlu0 %929 }
 0x36a   : > { %v931_v5 = vsub.f32 %v926_v57, %v930_v4 }
 0x36c   : > { %v932_v6 = vmul.f32 1.442695, %v931_v5  ;;  %v2685_v5 = vld [vmem:[%s3279_s12 + $0x18] sm:$0xff]  }
 0x36e   : > { %2707 = vpow2.f32 %v932_v6  ;;  %v2686_v6 = vld [vmem:[%s3279_s12 + $0x10] sm:$0xff]  }
 0x37b   : > { %v2708_v7 = vpop.eup %2707 }
 0x37c   : > { %v934_v8 = vsel %vm927_vm4, %v2708_v7, 0.0 }
 0x37d   : > { %935 = vadd.xlane.f32.xlu0 %v934_v8  ;;  %v2349_v8 = vld [vmem:[%s3278_s11] ss:$0 sm:$0xff] }
 0x3dc   : > { %v1043_v9 = vpop.xlane.xlu1 %1042 }
 0x3dd   : > { %v1044_v11 = vsub.f32 %v1040_v0, %v1043_v9 }
 0x3df   : > { %v1045_v13 = vmul.f32 1.442695, %v1044_v11 }
 0x3e1   : > { %2709 = vpow2.f32 %v1045_v13 }
 0x3ee   : > { %v2710_v14 = vpop.eup %2709 }
 0x3ef   : > { %v1047_v15 = vsel %vm927_vm4, %v2710_v14, 0.0 }
 0x3f0   : > { %1048 = vadd.xlane.f32.xlu0 %v1047_v15 }
 0x406   : > { %v936_v16 = vpop.xlane.xlu0 %935  ;;  %1054 = vrot.lane.b32.xlu0 %v877_v46, %s2748_s3 }
 0x407   : > { %2711 = vrcp.f32 %v936_v16 }
 0x414   : > { %v2712_v17 = vpop.eup %2711 }
 0x415   : > { %v938_v18 = vmul.f32 %v2712_v17, %v2708_v7  ;;  %v2687_v7 = vld [vmem:[%s3279_s12 + $0x8] sm:$0xff]  }
 0x417   : > { %v939_v19 = vpack.c.bf16 %v938_v18, %v938_v18 }
 0x419   : > { %2511 = vmatmul.mubr.msk.bf16.vlgmr.msra.gmra.mxu1 %vm927_vm4, %v939_v19 }
 0x41a   : > { %2522 = vmatprep.mubr.msk.bf16.mxu1 %vm2747_vm1, %v2746_v12 }
 0x479   : > { %v1049_v20 = vpop.xlane.xlu0 %1048 }
 0x47a   : > { %2713 = vrcp.f32 %v1049_v20 }
 0x47d   : > { %v1055_v22 = vpop.permute.xlu0 %1054 }
 0x47e   : > { %v1060_v23 = vsel %vm943_vm3, %v1055_v22, 0 }
 0x47f   : > { %2521 = vmatpush3.bf16.msra.mxu1 %v1060_v23 }
 0x480   : > { %2534 = vmatprep.subr.bf16.mxu1 %v2746_v12 }
 0x487   : > { %v2714_v24 = vpop.eup %2713 }
 0x488   : > { %v1051_v25 = vmul.f32 %v2714_v24, %v2710_v14 }
 0x48a   : > { %v1052_v29 = vpack.c.bf16 %v1051_v25, %v1051_v25 }
 0x48c   : > { %2523 = vmatmul.mubr.msk.bf16.vlgmr.msra.gmra.mxu1 %vm927_vm4, %v1052_v29 }
 0x48d   : > { %2538 = vmatprep.mubr.msk.bf16.mxu1 %vm2747_vm1, %v2746_v12  ;;  %2535 = vmatpush3.bf16.msra.mxu1 %v2683_v58  ;;  %v2695_v58 = vld [vmem:[%s3298_s30 + $0x50] ss:$12 sps:$4 sm:$0xff]  }
 0x48e   : > { %2536 = vmatprep.subr.bf16.mxu1 %v2746_v12 }
 0x4d9   : > { %v981_v31 = vpop.f32.mrf.mxu1 }
 0x4db   : > { %v2512_v32 = vpop.f32.mrf.mxu1 }
 0x4dd   : > { %v984_v34 = vpop.f32.mrf.mxu1 }
 0x4df   : > { %v2513_v35 = vpop.f32.mrf.mxu1 }
 0x54c   : > { %v1096_v37 = vpop.f32.mrf.mxu1 }
 0x54d   : > { %1103 = vrot.lane.b32.xlu0 %v1096_v37, %s2749_s24 }
 0x54e   : > { %v2524_v38 = vpop.f32.mrf.mxu1 }
 0x550   : > { %v1099_v39 = vpop.f32.mrf.mxu1 }
 0x552   : > { %v2525_v40 = vpop.f32.mrf.mxu1 }
 0x5bf   : > { %v1104_v41 = vpop.permute.xlu0 %1103 }
 0x5c0   : > { %v1106_v42 = vsel %vm878_vm2, %v981_v31, %v1104_v41 }
 0x5c1   : > { %v1107_v43 = vpack.c.bf16 %v1106_v42, %v1106_v42 }
 0x5c3   : > { %2531 = vmatmul.mubr.msk.bf16.vlgmr.msra.gmra.mxu0 %vm685_vm0, %v1107_v43 }
 0x5c4   : > { %2550 = vmatprep.mubr.msk.bf16.mxu0 %vm2747_vm1, %v2746_v12  ;;  %2543 = vmatpush3.bf16.msra.mxu0 %v2685_v5 }
 0x5c5   : > { %2544 = vmatprep.subr.bf16.mxu0 %v2746_v12 }
 0x5c8   : > { %2545 = vmatpush3.bf16.msra.mxu0 %v2686_v6 }
 0x5c9   : > { %2546 = vmatprep.subr.bf16.mxu0 %v2746_v12 }
 0x5cc   : > { %2547 = vmatpush3.bf16.msra.mxu0 %v2687_v7 }
 0x5cd   : > { %2548 = vmatprep.subr.bf16.mxu0 %v2746_v12 }
 0x683   : > { %v1163_v45 = vpop.f32.mrf.mxu0 }
 0x684   : > { %v1164_v46 = vadd.f32 %v2343_v44, %v1163_v45  ;;  %v2691_v44 = vld [vmem:[%s3298_s30 + $0x4c] ss:$12 sps:$4 sm:$0xff]   ;;  %v2689_v45 = vld [vmem:[%s3298_s30 + $0x48] ss:$12 sps:$4 sm:$0xff]  }
 0x685   : > { %v2532_v47 = vpop.f32.mrf.mxu0 }
 0x686   : > { %v1169_v48 = vadd.f32 %v1164_v46, %v2899_v21  ;;  %v2684_v21 = vld [vmem:[%s3277_s10] sm:$0xff]   ;;  %v2692_v47 = vld [vmem:[%s3298_s30 + $0x30] ss:$12 sps:$4 sm:$0xff]  }
 0x687   : > { %v1166_v49 = vpop.f32.mrf.mxu0  ;;  %2537 = vmatpush3.bf16.msra.mxu1 %v2684_v21  ;;  %v2694_v46 = vld [vmem:[%s3298_s30 + $0x34] ss:$12 sps:$4 sm:$0xff]  }
 0x688   : > { %v1172_v50 = vsel %vm685_vm0, %v1169_v48, 0.0  ;;  %1475 = vmatprep.subr.bf16.mxu1 %v2691_v44 }
 0x689   : > { %1173 = vadd.xlane.f32.xlu1 %v1172_v50  ;;  %v2533_v51 = vpop.f32.mrf.mxu0 }
 0x712   : > { %v1174_v52 = vpop.xlane.xlu1 %1173 }
 0x713   : > { %v1175_v53 = vmul.f32 0.03125, %v1174_v52  ;;  %v2359_v52 = vld [vmem:[%s3281_s14] ss:$0 sm:$0xff] }
 0x715   : > { %v1176_v55 = vsub.f32 %v1169_v48, %v1175_v53 }
 0x717   : > { %v1177_v56 = vmul.f32 %v1176_v55, %v1176_v55 }
 0x719   : > { %v1178_v57 = vsel %vm685_vm0, %v1177_v56, 0.0 }
 0x71a   : > { %1179 = vadd.xlane.f32.xlu0 %v1178_v57 }
 0x7a3   : > { %v1180_v59 = vpop.xlane.xlu0 %1179 }
 0x7a4   : > { %v1181_v60 = vmul.f32 0.03125, %v1180_v59  ;;  %v2696_v59 = vld [vmem:[%s3298_s30 + $0x38] ss:$12 sps:$4 sm:$0xff]  }
 0x7a6   : > { %v1182_v61 = vadd.f32 1e-12, %v1181_v60  ;;  %v2369_v60 = vld [vmem:[%s3301_s27 + $0x3] sm:$0x7] }
 0x7a7   : > { %v1424_v5 = vrot.slane %v2369_v60, %v754_v33 }
 0x7a8   : > { %2715 = vrsqrt.f32 %v1182_v61  ;;  %v1420_v61 = vrot.slane %v2369_v60, %v750_v27 }
 0x7b5   : > { %v2716_v62 = vpop.eup %2715 }
 0x7b6   : > { %v1184_v0 = vmul.f32 %v2716_v62, %v1176_v55  ;;  %v2360_v55 = vld [vmem:[%s3282_s15] ss:$0 sm:$0xff] }
 0x7b8   : > { %v1191_v2 = vmul.f32 %v2347_v63, %v1184_v0  ;;  %v1416_v63 = vrot.slane %v2369_v60, %v746_v28  ;;  %v2698_v60 = vld [vmem:[%s3273_s6 + $0x10] sm:$0xff]  }
 0x7ba   : > { %v1198_v3 = vadd.f32 %v2348_v1, %v1191_v2 }
 0x7bc   : > { %v1199_v4 = vpack.c.bf16 %v1198_v3, %v1198_v3 }
 0x7be   : > { %2539 = vmatmul.mubr.msk.bf16.vlgmr.msra.gmra.mxu1 %vm685_vm0, %v1199_v4 }
 0x7bf   : > { %1495 = vmatprep.mubr.bf16.mxu1 %v2745_v10  ;;  %v2688_v10 = vld [vmem:[%s3279_s12] sm:$0xff]   ;;  %1476 = vmatpush1.bf16.msra.mxu1 %v2689_v45 }
 0x7c0   : > { %2549 = vmatpush3.bf16.msra.mxu0 %v2688_v10  ;;  %1477 = vmatprep.subr.bf16.mxu1 %v2694_v46 }
 0x7c1   : > { %2562 = vmatprep.subr.bf16.mxu0 %v2746_v12 }
 0x7c3   : > { %1478 = vmatpush1.bf16.msra.mxu1 %v2692_v47 }
 0x7c4   : > { %2554 = vmatprep.subr.bf16.mxu1 %v2746_v12 }
 0x87e   : > { %v1255_v9 = vpop.f32.mrf.mxu1 }
 0x87f   : > { %v1256_v11 = vadd.f32 %v2349_v8, %v1255_v9 }
 0x880   : > { %v2540_v13 = vpop.f32.mrf.mxu1 }
 0x881   : > { %v1262_v14 = vmul.f32 0.044715, %v1256_v11  ;;  %v1261_v23 = vmul.f32 0.5, %v1256_v11 }
 0x882   : > { %v1258_v15 = vpop.f32.mrf.mxu1 }
 0x883   : > { %v1263_v16 = vmul.f32 %v1262_v14, %v1256_v11 }
 0x884   : > { %v2541_v17 = vpop.f32.mrf.mxu1 }
 0x885   : > { %v1264_v18 = vmul.f32 %v1263_v16, %v1256_v11 }
 0x887   : > { %v1265_v19 = vadd.f32 %v1264_v18, %v1256_v11 }
 0x889   : > { %v1266_v20 = vmul.f32 0.7978846, %v1265_v19 }
 0x88b   : > { %2717 = vtanh.f32 %v1266_v20 }
 0x898   : > { %v2718_v22 = vpop.eup %2717 }
 0x899   : > { %v1268_v24 = vadd.f32 1.0, %v2718_v22 }
 0x89b   : > { %v1269_v25 = vmul.f32 %v1268_v24, %v1261_v23 }
 0x89d   : > { %v1270_v29 = vpack.c.bf16 %v1269_v25, %v1269_v25 }
 0x89f   : > { %2551 = vmatmul.mubr.msk.bf16.vlgmr.msra.gmra.mxu0 %vm1301_vm5, %v1270_v29 }
 0x8a0   : > { %2564 = vmatprep.mubr.msk.bf16.mxu0 %vm2747_vm1, %v2746_v12 }
 0x95f   : > { %v1339_v31 = vpop.f32.mrf.mxu0 }
 0x960   : > { %v1340_v32 = vadd.f32 %v2353_v30, %v1339_v31 }
 0x961   : > { %v2552_v34 = vpop.f32.mrf.mxu0 }
 0x962   : > { %v1345_v35 = vadd.f32 %v1340_v32, %v1198_v3 }
 0x963   : > { %v1342_v36 = vpop.f32.mrf.mxu0 }
 0x964   : > { %v1348_v37 = vsel %vm685_vm0, %v1345_v35, 0.0 }
 0x965   : > { %1349 = vadd.xlane.f32.xlu1 %v1348_v37  ;;  %v2553_v38 = vpop.f32.mrf.mxu0 }
 0x9ee   : > { %v1350_v39 = vpop.xlane.xlu1 %1349 }
 0x9ef   : > { %v1351_v40 = vmul.f32 0.03125, %v1350_v39 }
 0x9f1   : > { %v1352_v41 = vsub.f32 %v1345_v35, %v1351_v40 }
 0x9f3   : > { %v1353_v42 = vmul.f32 %v1352_v41, %v1352_v41 }
 0x9f5   : > { %v1354_v43 = vsel %vm685_vm0, %v1353_v42, 0.0 }
 0x9f6   : > { %1355 = vadd.xlane.f32.xlu1 %v1354_v43 }
 0xa7f   : > { %v1356_v48 = vpop.xlane.xlu1 %1355 }
 0xa80   : > { %v1357_v49 = vmul.f32 0.03125, %v1356_v48 }
 0xa82   : > { %v1358_v50 = vadd.f32 1e-12, %v1357_v49 }
 0xa84   : > { %2719 = vrsqrt.f32 %v1358_v50 }
 0xa91   : > { %v2720_v51 = vpop.eup %2719 }
 0xa92   : > { %v1360_v53 = vmul.f32 %v2720_v51, %v1352_v41 }
 0xa94   : > { %v1367_v56 = vmul.f32 %v2359_v52, %v1360_v53 }
 0xa96   : > { %v3046_v57 = vadd.f32 %v2360_v55, %v1367_v56  ;;  %v2697_v55 = vld [vmem:[%s3273_s6 + $0x18] sm:$0xff]  }
 0xa98   : > { %v1411_v21 = vpack.c.bf16 %v3046_v57, %v3046_v57 }
 0xa9a   : > { %2395 = vmatmul.mubr.msk.bf16.vlgmr.msra.gmra.mxu1 %vm685_vm0, %v1411_v21 }
 0xa9b   : > { %2555 = vmatpush3.bf16.msra.mxu1 %v2695_v58  ;;  %2558 = vmatprep.mubr.msk.bf16.mxu1 %vm2747_vm1, %v2746_v12 }
 0xa9c   : > { %2556 = vmatprep.subr.bf16.mxu1 %v2746_v12 }
 0xa9f   : > { %2557 = vmatpush3.bf16.msra.mxu1 %v2696_v59 }
 0xaa0   : > { %2568 = vmatprep.subr.bf16.mxu1 %v2746_v12 }
 0xaa2   : > { %2559 = vmatmul.mubr.msk.bf16.vlgmr.msra.gmra.mxu1 %vm685_vm0, %v1411_v21 }
 0xaa3   : > { %2570 = vmatprep.mubr.msk.bf16.mxu1 %vm2747_vm1, %v2746_v12 }
 0xb5a   : > { %v1497_v62 = vpop.f32.mrf.mxu1 }
 0xb5b   : > { %v1498_v3 = vadd.f32 %v1497_v62, %v1416_v63 }
 0xb5c   : > { %v1499_v0 = vpop.f32.mrf.mxu1 }
 0xb5d   : > { %v1500_v1 = vadd.f32 %v1499_v0, %v1420_v61  ;;  %v1544_v27 = vpack.c.bf16 %v1498_v3, %v1498_v3 }
 0xb5e   : > { %v1501_v2 = vpop.f32.mrf.mxu1 }
 0xb5f   : > { %v1545_v4 = vpack.c.bf16 %v1500_v1, %v1500_v1 }
 0xb60   : > { %v1502_v6 = vpop.f32.mrf.mxu1 }
 0xb61   : > { %v1551_v7 = vsel %vm878_vm2, %v1545_v4, 0  ;;  %1657 = vrot.lane.b32.xlu1 %v1545_v4, %s2748_s3  ;;  %v2401_v4 = vld [vmem:[%s3274_s7 + $0x1] ss:$0 sm:$0xff] }
 0xb62   : > { %v1538_v10 = vpop.f32.mrf.mxu1  ;;  %2563 = vmatpush3.bf16.xpose.msra.mxu0 %v1551_v7 }
 0xb63   : > { %v1539_v8 = vadd.f32 %v1538_v10, %v1424_v5  ;;  %2574 = vmatprep.subr.bf16.mxu0 %v2746_v12 }
 0xb64   : > { %v2560_v28 = vpop.f32.mrf.mxu1 }
 0xb65   : > { %v1546_v9 = vpack.c.bf16 %v1539_v8, %v1539_v8  ;;  %1654 = vrot.lane.b32.xlu1 %v1544_v27, %s2748_s3 }
 0xb66   : > { %v1541_v11 = vpop.f32.mrf.mxu1 }
 0xb67   : > { %v1611_v13 = vsel %vm943_vm3, %v1546_v9, 0 }
 0xb68   : > { %v2561_v26 = vpop.f32.mrf.mxu1  ;;  %2569 = vmatpush3.bf16.msra.mxu1 %v1611_v13 }
 0xb69   : > { %2565 = vmatmul.mubr.msk.bf16.vlgmr.msra.gmra.mxu0 %vm878_vm2, %v1544_v27  ;;  %2580 = vmatprep.subr.bf16.mxu1 %v2746_v12 }
 0xb6a   : > { %2576 = vmatprep.mubr.msk.bf16.mxu0 %vm2747_vm1, %v2746_v12 }
 0xbd3   : > { %v1658_v33 = vpop.permute.xlu1 %1657 }
 0xbd4   : > { %v1663_v14 = vsel %vm878_vm2, %v1658_v33, 0 }
 0xbd5   : > { %2575 = vmatpush3.bf16.xpose.msra.mxu0 %v1663_v14  ;;  %v2699_v14 = vld [vmem:[%s3277_s10 + $0x18] sm:$0xff]  }
 0xbd6   : > { %2586 = vmatprep.subr.bf16.mxu0 %v2746_v12 }
 0xbd7   : > { %v1655_v15 = vpop.permute.xlu1 %1654 }
 0xbdc   : > { %2577 = vmatmul.mubr.msk.bf16.vlgmr.msra.gmra.mxu0 %vm878_vm2, %v1655_v15 }
 0xbdd   : > { %2590 = vmatprep.mubr.msk.bf16.mxu0 %vm2747_vm1, %v2746_v12  ;;  %2587 = vmatpush3.bf16.msra.mxu0 %v2697_v55 }
 0xbde   : > { %2588 = vmatprep.subr.bf16.mxu0 %v2746_v12 }
 0xbe1   : > { %2589 = vmatpush3.bf16.msra.mxu0 %v2698_v60 }
 0xbe2   : > { %2602 = vmatprep.subr.bf16.mxu0 %v2746_v12 }
 0xc29   : > { %v1587_v16 = vpop.f32.mrf.mxu0 }
 0xc2a   : > { %v1593_v17 = vmul.f32 0.25, %v1587_v16 }
 0xc2b   : > { %v2566_v18 = vpop.f32.mrf.mxu0 }
 0xc2c   : > { %v1594_v19 = vadd.f32 %v1593_v17, %v2949_v54 }
 0xc2d   : > { %v1590_v20 = vpop.f32.mrf.mxu0 }
 0xc2e   : > { %v1595_v22 = vsel %vm927_vm4, %v1594_v19, -inf }
 0xc2f   : > { %1596 = vmax.xlane.f32.xlu0 %v1595_v22  ;;  %v2567_v23 = vpop.f32.mrf.mxu0  ;;  %v2408_v22 = vld [vmem:[%s3276_s9 + $0x1] ss:$0 sm:$0xff] }
 0xc9c   : > { %v1699_v24 = vpop.f32.mrf.mxu0 }
 0xc9d   : > { %v1705_v25 = vmul.f32 0.25, %v1699_v24 }
 0xc9e   : > { %v2578_v29 = vpop.f32.mrf.mxu0 }
 0xc9f   : > { %v1706_v30 = vadd.f32 %v1705_v25, %v2949_v54  ;;  %v2701_v29 = vld [vmem:[%s3279_s12 + $0x38] sm:$0xff]  }
 0xca0   : > { %v1702_v31 = vpop.f32.mrf.mxu0 }
 0xca1   : > { %v1707_v32 = vsel %vm927_vm4, %v1706_v30, -inf  ;;  %v2703_v31 = vld [vmem:[%s3279_s12 + $0x28] sm:$0xff]  }
 0xca2   : > { %1708 = vmax.xlane.f32.xlu1 %v1707_v32  ;;  %v2579_v34 = vpop.f32.mrf.mxu0  ;;  %v2704_v32 = vld [vmem:[%s3279_s12 + $0x20] sm:$0xff]  }
 0xca3   : > { %v2409_v34 = vld [vmem:[%s3278_s11 + $0x1] ss:$0 sm:$0xff] }
 0xcb8   : > { %v1597_v35 = vpop.xlane.xlu0 %1596 }
 0xcb9   : > { %v1598_v36 = vsub.f32 %v1594_v19, %v1597_v35  ;;  %v2407_v19 = vld [vmem:[%s3275_s8 + $0x1] ss:$0 sm:$0xff] }
 0xcbb   : > { %v1599_v37 = vmul.f32 1.442695, %v1598_v36 }
 0xcbd   : > { %2721 = vpow2.f32 %v1599_v37 }
 0xcca   : > { %v2722_v38 = vpop.eup %2721 }
 0xccb   : > { %v1601_v39 = vsel %vm927_vm4, %v2722_v38, 0.0 }
 0xccc   : > { %1602 = vadd.xlane.f32.xlu0 %v1601_v39 }
 0xd2b   : > { %v1709_v40 = vpop.xlane.xlu1 %1708 }
 0xd2c   : > { %v1710_v41 = vsub.f32 %v1706_v30, %v1709_v40  ;;  %v2702_v30 = vld [vmem:[%s3279_s12 + $0x30] sm:$0xff]  }
 0xd2e   : > { %v1711_v42 = vmul.f32 1.442695, %v1710_v41 }
 0xd30   : > { %2723 = vpow2.f32 %v1711_v42 }
 0xd3d   : > { %v2724_v43 = vpop.eup %2723 }
 0xd3e   : > { %v1713_v54 = vsel %vm927_vm4, %v2724_v43, 0.0 }
 0xd3f   : > { %1714 = vadd.xlane.f32.xlu0 %v1713_v54 }
 0xd55   : > { %v1603_v44 = vpop.xlane.xlu0 %1602  ;;  %1720 = vrot.lane.b32.xlu0 %v1546_v9, %s2748_s3 }
 0xd56   : > { %2725 = vrcp.f32 %v1603_v44 }
 0xd63   : > { %v2726_v45 = vpop.eup %2725 }
 0xd64   : > { %v1605_v46 = vmul.f32 %v2726_v45, %v2722_v38 }
 0xd66   : > { %v1606_v47 = vpack.c.bf16 %v1605_v46, %v1605_v46 }
 0xd68   : > { %2571 = vmatmul.mubr.msk.bf16.vlgmr.msra.gmra.mxu1 %vm927_vm4, %v1606_v47 }
 0xd69   : > { %2582 = vmatprep.mubr.msk.bf16.mxu1 %vm2747_vm1, %v2746_v12 }
 0xdc8   : > { %v1715_v48 = vpop.xlane.xlu0 %1714 }
 0xdc9   : > { %2727 = vrcp.f32 %v1715_v48 }
 0xdcc   : > { %v1721_v49 = vpop.permute.xlu0 %1720 }
 0xdcd   : > { %v1726_v50 = vsel %vm943_vm3, %v1721_v49, 0  ;;  %v2413_v49 = vld [vmem:[%s3280_s13 + $0x1] ss:$0 sm:$0xff] }
 0xdce   : > { %2581 = vmatpush3.bf16.msra.mxu1 %v1726_v50 }
 0xdcf   : > { %2594 = vmatprep.subr.bf16.mxu1 %v2746_v12 }
 0xdd6   : > { %v2728_v51 = vpop.eup %2727 }
 0xdd7   : > { %v1717_v52 = vmul.f32 %v2728_v51, %v2724_v43 }
 0xdd9   : > { %v1718_v53 = vpack.c.bf16 %v1717_v52, %v1717_v52 }
 0xddb   : > { %2583 = vmatmul.mubr.msk.bf16.vlgmr.msra.gmra.mxu1 %vm927_vm4, %v1718_v53 }
 0xddc   : > { %2598 = vmatprep.mubr.msk.bf16.mxu1 %vm2747_vm1, %v2746_v12  ;;  %2595 = vmatpush3.bf16.msra.mxu1 %v2699_v14  ;;  %v2140_v14 = vld [vmem:[%s3285_s18 + $0x50] sm:$0xff] }
 0xddd   : > { %2596 = vmatprep.subr.bf16.mxu1 %v2746_v12 }
 0xe28   : > { %v1647_v56 = vpop.f32.mrf.mxu1 }
 0xe2a   : > { %v2572_v58 = vpop.f32.mrf.mxu1 }
 0xe2c   : > { %v1650_v21 = vpop.f32.mrf.mxu1 }
 0xe2e   : > { %v2573_v59 = vpop.f32.mrf.mxu1 }
 0xe9b   : > { %v1762_v61 = vpop.f32.mrf.mxu1 }
 0xe9c   : > { %1769 = vrot.lane.b32.xlu0 %v1762_v61, %s2749_s24 }
 0xe9d   : > { %v2584_v62 = vpop.f32.mrf.mxu1 }
 0xe9f   : > { %v1765_v63 = vpop.f32.mrf.mxu1 }
 0xea0   : > { %v2047_v63 = vld [vmem:[%s3283_s16 + $0x18] sm:$0xff] }
 0xea1   : > { %v2585_v0 = vpop.f32.mrf.mxu1 }
 0xea2   : > { %v2046_v0 = vld [vmem:[%s3283_s16 + $0x10] sm:$0xff] }
 0xf0e   : > { %v1770_v1 = vpop.permute.xlu0 %1769 }
 0xf0f   : > { %v1772_v2 = vsel %vm878_vm2, %v1647_v56, %v1770_v1  ;;  %v2045_v1 = vld [vmem:[%s3283_s16 + $0x8] sm:$0xff] }
 0xf10   : > { %v1773_v3 = vpack.c.bf16 %v1772_v2, %v1772_v2  ;;  %v2044_v2 = vld [vmem:[%s3283_s16] sm:$0xff] }
 0xf12   : > { %2591 = vmatmul.mubr.msk.bf16.vlgmr.msra.gmra.mxu0 %vm685_vm0, %v1773_v3 }
 0xf13   : > { %2610 = vmatprep.mubr.msk.bf16.mxu0 %vm2747_vm1, %v2746_v12  ;;  %2603 = vmatpush3.bf16.msra.mxu0 %v2701_v29 }
 0xf14   : > { %2604 = vmatprep.subr.bf16.mxu0 %v2746_v12 }
 0xf17   : > { %2605 = vmatpush3.bf16.msra.mxu0 %v2702_v30 }
 0xf18   : > { %2606 = vmatprep.subr.bf16.mxu0 %v2746_v12 }
 0xf1b   : > { %2607 = vmatpush3.bf16.msra.mxu0 %v2703_v31 }
 0xf1c   : > { %2608 = vmatprep.subr.bf16.mxu0 %v2746_v12 }
 0xf1f   : > { %2609 = vmatpush3.bf16.msra.mxu0 %v2704_v32 }
 0xfd2   : > { %v1829_v5 = vpop.f32.mrf.mxu0 }
 0xfd3   : > { %v1830_v6 = vadd.f32 %v2401_v4, %v1829_v5 }
 0xfd4   : > { %v2592_v7 = vpop.f32.mrf.mxu0 }
 0xfd5   : > { %v1835_v10 = vadd.f32 %v1830_v6, %v3046_v57  ;;  %v2700_v57 = vld [vmem:[%s3277_s10 + $0x10] sm:$0xff]   ;;  %v2421_v7 = vld [vmem:[%s3281_s14 + $0x1] ss:$0 sm:$0xff] }
 0xfd6   : > { %v1832_v27 = vpop.f32.mrf.mxu0  ;;  %2597 = vmatpush3.bf16.msra.mxu1 %v2700_v57  ;;  %v2139_v57 = vld [vmem:[%s3285_s18 + $0x48] sm:$0xff] }
 0xfd7   : > { %v1840_v8 = vsel %vm685_vm0, %v1835_v10, 0.0  ;;  %2614 = vmatprep.subr.mxu1 %v2746_v12  ;;  %v2422_v27 = vld [vmem:[%s3282_s15 + $0x1] ss:$0 sm:$0xff] }
 0xfd8   : > { %1841 = vadd.xlane.f32.xlu1 %v1840_v8  ;;  %v2593_v28 = vpop.f32.mrf.mxu0 }
0x1061   : > { %v1842_v9 = vpop.xlane.xlu1 %1841 }
0x1062   : > { %v1843_v11 = vmul.f32 0.03125, %v1842_v9  ;;  %v2145_v9 = vld [vmem:[%s3285_s18 + $0x78] sm:$0xff] }
0x1064   : > { %v1844_v13 = vsub.f32 %v1835_v10, %v1843_v11  ;;  %v2144_v11 = vld [vmem:[%s3285_s18 + $0x70] sm:$0xff] }
0x1066   : > { %v1845_v26 = vmul.f32 %v1844_v13, %v1844_v13 }
0x1068   : > { %v1846_v33 = vsel %vm685_vm0, %v1845_v26, 0.0  ;;  %v2142_v26 = vld [vmem:[%s3285_s18 + $0x60] sm:$0xff] }
0x1069   : > { %1847 = vadd.xlane.f32.xlu0 %v1846_v33  ;;  %v2141_v33 = vld [vmem:[%s3285_s18 + $0x58] sm:$0xff] }
0x10f2   : > { %v1848_v15 = vpop.xlane.xlu0 %1847 }
0x10f3   : > { %v1849_v16 = vmul.f32 0.03125, %v1848_v15  ;;  %v2138_v15 = vld [vmem:[%s3285_s18 + $0x40] sm:$0xff] }
0x10f5   : > { %v1850_v17 = vadd.f32 1e-12, %v1849_v16  ;;  %v2137_v16 = vld [vmem:[%s3285_s18 + $0x38] sm:$0xff] }
0x10f7   : > { %2729 = vrsqrt.f32 %v1850_v17  ;;  %v2136_v17 = vld [vmem:[%s3285_s18 + $0x30] sm:$0xff] }
0x1104   : > { %v2730_v18 = vpop.eup %2729 }
0x1105   : > { %v1852_v20 = vmul.f32 %v2730_v18, %v1844_v13  ;;  %v2143_v13 = vld [vmem:[%s3285_s18 + $0x68] sm:$0xff] }
0x1106   : > { %v2135_v18 = vld [vmem:[%s3285_s18 + $0x28] sm:$0xff] }
0x1107   : > { %v1859_v23 = vmul.f32 %v2407_v19, %v1852_v20  ;;  %v2134_v19 = vld [vmem:[%s3285_s18 + $0x20] sm:$0xff]  ;;  %v2133_v20 = vld [vmem:[%s3285_s18 + $0x18] sm:$0xff] }
0x1109   : > { %v1866_v24 = vadd.f32 %v2408_v22, %v1859_v23  ;;  %v2132_v22 = vld [vmem:[%s3285_s18 + $0x10] sm:$0xff]  ;;  %v2131_v23 = vld [vmem:[%s3285_s18 + $0x8] sm:$0xff] }
0x110b   : > { %v1867_v25 = vpack.c.bf16 %v1866_v24, %v1866_v24 }
0x110d   : > { %2599 = vmatmul.mubr.msk.bf16.vlgmr.msra.gmra.mxu1 %vm685_vm0, %v1867_v25  ;;  %v2423_v25 = vld [vmem:[%s3284_s17] ss:$0 sm:$0xff] }
0x110e   : > { %2622 = vmatprep.mubr.msk.f32.mxu1 %vm2747_vm1, %v2746_v12  ;;  %2615 = vmatpush3.msra.mxu1 %v2047_v63 }
0x110f   : > { %2616 = vmatprep.subr.mxu1 %v2746_v12 }
0x1110   : > { %2617 = vmatpush3.msra.mxu1 %v2046_v0 }
0x1111   : > { %2618 = vmatprep.subr.mxu1 %v2746_v12 }
0x1112   : > { %2619 = vmatpush3.msra.mxu1 %v2045_v1 }
0x1113   : > { %2620 = vmatprep.subr.mxu1 %v2746_v12 }
0x1114   : > { %2621 = vmatpush3.msra.mxu1 %v2044_v2 }
0x1115   : > { %2625 = vmatprep.subr.mxu1 %v2746_v12 }
0x11cd   : > { %v1923_v35 = vpop.f32.mrf.mxu1 }
0x11ce   : > { %v1924_v36 = vadd.f32 %v2409_v34, %v1923_v35 }
0x11cf   : > { %v2600_v37 = vpop.f32.mrf.mxu1 }
0x11d0   : > { %v1930_v38 = vmul.f32 0.044715, %v1924_v36  ;;  %v1929_v45 = vmul.f32 0.5, %v1924_v36 }
0x11d1   : > { %v1926_v39 = vpop.f32.mrf.mxu1 }
0x11d2   : > { %v1931_v40 = vmul.f32 %v1930_v38, %v1924_v36 }
0x11d3   : > { %v2601_v41 = vpop.f32.mrf.mxu1 }
0x11d4   : > { %v1932_v42 = vmul.f32 %v1931_v40, %v1924_v36 }
0x11d6   : > { %v1933_v43 = vadd.f32 %v1932_v42, %v1924_v36 }
0x11d8   : > { %v1934_v54 = vmul.f32 0.7978846, %v1933_v43 }
0x11da   : > { %2731 = vtanh.f32 %v1934_v54 }
0x11e7   : > { %v2732_v44 = vpop.eup %2731 }
0x11e8   : > { %v1936_v46 = vadd.f32 1.0, %v2732_v44 }
0x11ea   : > { %v1937_v47 = vmul.f32 %v1936_v46, %v1929_v45 }
0x11ec   : > { %v1938_v48 = vpack.c.bf16 %v1937_v47, %v1937_v47 }
0x11ee   : > { %2611 = vmatmul.mubr.msk.bf16.vlgmr.msra.gmra.mxu0 %vm1301_vm5, %v1938_v48 }
0x12ae   : > { %v2006_v50 = vpop.f32.mrf.mxu0 }
0x12af   : > { %v2007_v51 = vadd.f32 %v2413_v49, %v2006_v50 }
0x12b0   : > { %v2612_v52 = vpop.f32.mrf.mxu0 }
0x12b1   : > { %v2012_v53 = vadd.f32 %v2007_v51, %v1866_v24  ;;  %v2130_v24 = vld [vmem:[%s3285_s18] sm:$0xff] }
0x12b2   : > { %v2009_v55 = vpop.f32.mrf.mxu0 }
0x12b3   : > { %v2017_v56 = vsel %vm685_vm0, %v2012_v53, 0.0 }
0x12b4   : > { %2018 = vadd.xlane.f32.xlu1 %v2017_v56  ;;  %v2613_v58 = vpop.f32.mrf.mxu0 }
0x133d   : > { %v2019_v21 = vpop.xlane.xlu1 %2018 }
0x133e   : > { %v2020_v59 = vmul.f32 0.03125, %v2019_v21 }
0x1340   : > { %v2021_v60 = vsub.f32 %v2012_v53, %v2020_v59 }
0x1342   : > { %v2022_v61 = vmul.f32 %v2021_v60, %v2021_v60 }
0x1344   : > { %v2023_v62 = vsel %vm685_vm0, %v2022_v61, 0.0 }
0x1345   : > { %2024 = vadd.xlane.f32.xlu1 %v2023_v62 }
0x13ce   : > { %v2025_v3 = vpop.xlane.xlu1 %2024 }
0x13cf   : > { %v2026_v4 = vmul.f32 0.03125, %v2025_v3 }
0x13d1   : > { %v2027_v5 = vadd.f32 1e-12, %v2026_v4 }
0x13d3   : > { %2733 = vrsqrt.f32 %v2027_v5 }
0x13e0   : > { %v2734_v6 = vpop.eup %2733 }
0x13e1   : > { %v2029_v10 = vmul.f32 %v2734_v6, %v2021_v60 }
0x13e3   : > { %v2036_v8 = vmul.f32 %v2421_v7, %v2029_v10 }
0x13e5   : > { %v2043_v28 = vadd.f32 %v2422_v27, %v2036_v8 }
0x13e7   : > { %2623 = vmatmul.mubr.msk.f32.vlgmr.msra.gmra.mxu1 %vm685_vm0, %v2043_v28 }
0x13e8   : > { %2626 = vmatpush3.msra.mxu1 %v2145_v9  ;;  %2657 = vmatprep.mubr.msk.f32.mxu1 %vm2747_vm1, %v2746_v12 }
0x13e9   : > { %2627 = vmatprep.subr.mxu1 %v2746_v12 }
0x13ea   : > { %2628 = vmatpush3.msra.mxu1 %v2144_v11 }
0x13eb   : > { %2629 = vmatprep.subr.mxu1 %v2746_v12 }
0x13ec   : > { %2630 = vmatpush3.msra.mxu1 %v2143_v13 }
0x13ed   : > { %2631 = vmatprep.subr.mxu1 %v2746_v12 }
0x13ee   : > { %2632 = vmatpush3.msra.mxu1 %v2142_v26 }
0x13ef   : > { %2633 = vmatprep.subr.mxu1 %v2746_v12 }
0x13f0   : > { %2634 = vmatpush3.msra.mxu1 %v2141_v33 }
0x13f1   : > { %2635 = vmatprep.subr.mxu1 %v2746_v12 }
0x13f2   : > { %2636 = vmatpush3.msra.mxu1 %v2140_v14 }
0x13f3   : > { %2637 = vmatprep.subr.mxu1 %v2746_v12 }
0x13f4   : > { %2638 = vmatpush3.msra.mxu1 %v2139_v57 }
0x13f5   : > { %2639 = vmatprep.subr.mxu1 %v2746_v12 }
0x13f6   : > { %2640 = vmatpush3.msra.mxu1 %v2138_v15 }
0x13f7   : > { %2641 = vmatprep.subr.mxu1 %v2746_v12 }
0x13f8   : > { %2642 = vmatpush3.msra.mxu1 %v2137_v16 }
0x13f9   : > { %2643 = vmatprep.subr.mxu1 %v2746_v12 }
0x13fa   : > { %2644 = vmatpush3.msra.mxu1 %v2136_v17 }
0x13fb   : > { %2645 = vmatprep.subr.mxu1 %v2746_v12 }
0x13fc   : > { %2646 = vmatpush3.msra.mxu1 %v2135_v18 }
0x13fd   : > { %2647 = vmatprep.subr.mxu1 %v2746_v12 }
0x13fe   : > { %2648 = vmatpush3.msra.mxu1 %v2134_v19 }
0x13ff   : > { %2649 = vmatprep.subr.mxu1 %v2746_v12 }
0x1400   : > { %2650 = vmatpush3.msra.mxu1 %v2133_v20 }
0x1401   : > { %2651 = vmatprep.subr.mxu1 %v2746_v12 }
0x1402   : > { %2652 = vmatpush3.msra.mxu1 %v2132_v22 }
0x1403   : > { %2653 = vmatprep.subr.mxu1 %v2746_v12 }
0x1404   : > { %2654 = vmatpush3.msra.mxu1 %v2131_v23 }
0x1405   : > { %2655 = vmatprep.subr.mxu1 %v2746_v12  ;;  %v2425_v12 = vld [vmem:[%s3286_s19] ss:$0 sm:$0xff] }
0x1406   : > { %2656 = vmatpush3.msra.mxu1 %v2130_v24 }
0x14a7   : > { %v2124_v29 = vpop.f32.mrf.mxu1 }
0x14a8   : > { %v2125_v30 = vadd.f32 %v2423_v25, %v2124_v29 }
0x14a9   : > { %v2624_v31 = vpop.f32.mrf.mxu1 }
0x14aa   : > { %2735 = vtanh.f32 %v2125_v30 }
0x14b7   : > { %v2736_v32 = vpop.eup %2735 }
0x14b8   : > { %2129 = vst [vmem:[%s675_s28] sm:$0xff] %v2736_v32  ;;  %2658 = vmatmul.mubr.f32.vlgmr.msra.gmra.mxu1 %v2736_v32 }
0x1578   : > { %v2219_v34 = vpop.f32.mrf.mxu1 }
0x1579   : > { %v2220_v35 = vadd.f32 %v2425_v12, %v2219_v34 }
0x157a   : > { %v2659_v36 = vpop.f32.mrf.mxu1 }
0x157b   : > { %2223 = vst [vmem:[%s679_s5] sm:$0xff] %v2220_v35 }
0x157c PF: > { %s32_s2 = sadd.s32 1, %s2743_s2  }
0x157d   : > { %p29_p4 = scmp.ge.s32.totalorder %s32_s2, 4  }
0x157f   :  { %31 = sbr.rel (!%p29_p4) target bundleno = 7 (0x7), region = 157 }

</bundles_post_ra>
